<compile_context>
chip_gen: v5e
topology: v5e:2x2
jax: 0.10.0
libtpu: 0.0.40
codegen_flags: <defaults>
</compile_context>

<pallas_src>
from math import exp
import functools

import jax
import jax.numpy as jnp
import numpy as np
from jax.experimental import pallas as pl
from jax.experimental.pallas import tpu as pltpu


def gaussian_1d(window_size: int, sigma: float) -> np.ndarray:
    g = np.array(
        [exp(-((x - window_size // 2) ** 2) / float(2 * sigma ** 2))
         for x in range(window_size)],
        dtype=np.float64,
    )
    return (g / g.sum()).astype(np.float32)


def conv_band_matrix(n: int, taps: np.ndarray) -> np.ndarray:
    """Banded (n, n) matrix M with M[i, j] = taps[i - j + pad].

    Right-multiplying (rows, n) data by M performs a zero-padded 'same' 1-D
    correlation along the last axis; left-multiplying (n, cols) data by M.T
    correlates along the first axis.  (Gaussian is symmetric, so correlation
    == convolution, matching torch.nn.functional.conv2d.)
    """
    ws = len(taps)
    pad = ws // 2
    m = np.zeros((n, n), dtype=np.float32)
    for j in range(n):
        for i in range(max(0, j - pad), min(n, j + pad + 1)):
            m[i, j] = taps[i - j + pad]
    return m


def _ssim_kernel(img1_ref, img2_ref, bw_ref, bh_ref, out_ref, *, Nb, C, H, W):
    """One grid step: Nb images. Gaussian filtering on the MXU + SSIM map."""
    NC = Nb * C
    NCH = NC * H

    x1 = img1_ref[...].astype(jnp.float32).reshape(NCH, W)
    x2 = img2_ref[...].astype(jnp.float32).reshape(NCH, W)

    # Five conv inputs stacked along the sublane axis -> the horizontal
    # zero-padded 'same' Gaussian pass is ONE MXU matmul over the whole slab.
    f = jnp.concatenate([x1, x2, x1 * x1, x2 * x2, x1 * x2], axis=0)  # (5*NCH, W)
    fh = jnp.dot(f, bw_ref[...], preferred_element_type=jnp.float32)  # (5*NCH, W)

    # Re-stack the five filtered fields along the LANE axis so the vertical
    # pass is one (H, H) @ (H, 5*W) matmul per (image, channel) plane that
    # reuses the same resident (H, H) band — no block-diagonal kron.
    fv = jnp.concatenate([fh[k * NCH:(k + 1) * NCH, :] for k in range(5)],
                         axis=1)                                      # (NCH, 5*W)
    bh = bh_ref[...]                                                  # (H, H)

    C1 = 0.01 ** 2
    C2 = 0.03 ** 2
    inv_cnt = 1.0 / float(C * H * W)

    sums = [0.0] * Nb
    for p in range(NC):                      # static loop over Nb*C planes
        r = jnp.dot(bh, fv[p * H:(p + 1) * H, :],
                    preferred_element_type=jnp.float32)               # (H, 5*W)
        mu1 = r[:, 0 * W:1 * W]
        mu2 = r[:, 1 * W:2 * W]
        mu1_sq = mu1 * mu1
        mu2_sq = mu2 * mu2
        mu1_mu2 = mu1 * mu2
        # Fold E[x^2]/E[xy] into the sigma terms immediately (small live set).
        sigma1_sq = r[:, 2 * W:3 * W] - mu1_sq
        sigma2_sq = r[:, 3 * W:4 * W] - mu2_sq
        sigma12 = r[:, 4 * W:5 * W] - mu1_mu2

        num = (2.0 * mu1_mu2 + C1) * (2.0 * sigma12 + C2)
        den = (mu1_sq + mu2_sq + C1) * (sigma1_sq + sigma2_sq + C2)
        inv = pl.reciprocal(den, approx=True)     # EUP path
        inv = inv * (2.0 - den * inv)             # one Newton step -> ~f32 exact

        n_img = p // C
        sums[n_img] = sums[n_img] + jnp.sum(num * inv)

    # Per-image means; store each as a (1,1,1) tile (same store pattern as v2).
    for n in range(Nb):
        out_ref[n:n + 1, :, :] = (sums[n] * inv_cnt).reshape(1, 1, 1)


def _choose_nb(N, C, H, W, in_itemsize, budget_bytes=36 * 1024 * 1024):
    """Largest divisor of N whose per-step VMEM footprint fits the budget."""
    per_img = C * H * W

    def step_bytes(nb):
        imgs = 2 * 2 * nb * per_img * in_itemsize     # 2 inputs, double-buffered
        slabs = 3 * 5 * nb * per_img * 4              # f, fh, fv (f32)
        bands = 2 * 2 * (H * H + W * W) * 4           # bw, bh (double-buffered)
        return imgs + slabs + bands

    best = 1
    for nb in range(1, N + 1):
        if N % nb == 0 and step_bytes(nb) <= budget_bytes:
            best = nb
    return best


def ssim_pallas(img1: jax.Array, img2: jax.Array,
                window_size: int = 11, size_average: bool = True) -> jax.Array:
    assert img1.shape == img2.shape and img1.ndim == 4
    N, C, H, W = img1.shape

    g = gaussian_1d(window_size, 1.5)
    bw = jnp.asarray(conv_band_matrix(W, g))       # horizontal: right-multiply
    bh = jnp.asarray(conv_band_matrix(H, g).T)     # vertical: left-multiply (H,H)

    nb = _choose_nb(N, C, H, W, jnp.dtype(img1.dtype).itemsize)
    # TODO(synk): if even nb=1 exceeds the VMEM budget (very large planes on
    # v7x's 64 MiB VMEM), add H/W band-tiling with window_size//2 halos.

    kernel = functools.partial(_ssim_kernel, Nb=nb, C=C, H=H, W=W)

    per_img = pl.pallas_call(
        kernel,
        out_shape=jax.ShapeDtypeStruct((N, 1, 1), jnp.float32),
        grid_spec=pltpu.PrefetchScalarGridSpec(
            num_scalar_prefetch=0,
            grid=(N // nb,),
            in_specs=[
                pl.BlockSpec((nb, C, H, W), lambda n: (n, 0, 0, 0)),
                pl.BlockSpec((nb, C, H, W), lambda n: (n, 0, 0, 0)),
                pl.BlockSpec((W, W), lambda n: (0, 0)),   # constant band (small)
                pl.BlockSpec((H, H), lambda n: (0, 0)),   # constant band (small)
            ],
            out_specs=pl.BlockSpec((nb, 1, 1), lambda n: (n, 0, 0)),
        ),
        compiler_params=pltpu.CompilerParams(
            dimension_semantics=("parallel",),
            vmem_limit_bytes=48 * 1024 * 1024,
        ),
    )(img1, img2, bw, bh)   # native dtype in; cast happens on the VPU in-kernel

    per_img = per_img.reshape(N)
    if size_average:
        return jnp.mean(per_img)
    # Per-image mean over (C, H, W) == ssim_map.mean(1).mean(1).mean(1).
    return per_img


def ssim_reference(img1, img2, window_size=11):
    """Pure-JAX reference mirroring the PyTorch _ssim (size_average=True)."""
    N, C, H, W = img1.shape
    pad = window_size // 2
    g = jnp.asarray(gaussian_1d(window_size, 1.5))
    w2d = jnp.outer(g, g)
    kern = jnp.broadcast_to(w2d, (C, 1, window_size, window_size))

    def conv(x):
        return jax.lax.conv_general_dilated(
            x, kern, (1, 1), [(pad, pad), (pad, pad)],
            dimension_numbers=("NCHW", "OIHW", "NCHW"),
            feature_group_count=C,
            precision=jax.lax.Precision.HIGHEST)

    mu1, mu2 = conv(img1), conv(img2)
    mu1_sq, mu2_sq, mu1_mu2 = mu1 * mu1, mu2 * mu2, mu1 * mu2
    sigma1_sq = conv(img1 * img1) - mu1_sq
    sigma2_sq = conv(img2 * img2) - mu2_sq
    sigma12 = conv(img1 * img2) - mu1_mu2
    C1, C2 = 0.01 ** 2, 0.03 ** 2
    ssim_map = ((2 * mu1_mu2 + C1) * (2 * sigma12 + C2)) / (
        (mu1_sq + mu2_sq + C1) * (sigma1_sq + sigma2_sq + C2))
    return jnp.mean(ssim_map)


if __name__ == "__main__":
    key = jax.random.PRNGKey(0)
    k1, k2 = jax.random.split(key)
    N, C, H, W = 2, 4, 16, 16
    img1 = jax.random.uniform(k1, (N, C, H, W), dtype=jnp.float32)
    img2 = jnp.clip(img1 + 0.1 * jax.random.normal(k2, (N, C, H, W)), 0.0, 1.0)
    img2 = img2.astype(jnp.float32)

    out = ssim_pallas(img1, img2, window_size=11, size_average=True)
    out = jax.block_until_ready(out)

    ref = jax.block_until_ready(ssim_reference(img1, img2, window_size=11))
    assert abs(float(out) - float(ref)) < 1e-4, (float(out), float(ref))

    print("KERNEL_OK")
</pallas_src>

<mosaic_0001>
module attributes {stable_mosaic.version = 11 : i64} {
  func.func @_ssim_kernel(%arg0: i32, %arg1: memref<2x4x16x16xf32, #tpu.memory_space<vmem>>, %arg2: memref<2x4x16x16xf32, #tpu.memory_space<vmem>>, %arg3: memref<16x16xf32, #tpu.memory_space<vmem>>, %arg4: memref<16x16xf32, #tpu.memory_space<vmem>>, %arg5: memref<2x1x1xf32, #tpu.memory_space<vmem>>) attributes {dimension_semantics = [#tpu.dimension_semantics<parallel>], iteration_bounds = array<i64: 1>, scalar_prefetch = 0 : i64, scratch_operands = 0 : i64, tpu.core_type = #tpu.core_type<tc>, window_params = [{transform_indices = @transform_0, window_bounds = array<i64: 2, 4, 16, 16>}, {transform_indices = @transform_1, window_bounds = array<i64: 2, 4, 16, 16>}, {pipeline_mode = #tpu.pipeline_mode<synchronous>, transform_indices = @transform_2, window_bounds = array<i64: 16, 16>}, {pipeline_mode = #tpu.pipeline_mode<synchronous>, transform_indices = @transform_3, window_bounds = array<i64: 16, 16>}, {transform_indices = @transform_4, window_bounds = array<i64: 2, 1, 1>}]} {
    %c0 = arith.constant 0 : index
    %c0_0 = arith.constant 0 : index
    %c0_1 = arith.constant 0 : index
    %c0_2 = arith.constant 0 : index
    %0 = vector.load %arg1[%c0, %c0_0, %c0_1, %c0_2] : memref<2x4x16x16xf32, #tpu.memory_space<vmem>>, vector<2x4x16x16xf32>
    %1 = vector.shape_cast %0 : vector<2x4x16x16xf32> to vector<128x16xf32>
    %c0_3 = arith.constant 0 : index
    %c0_4 = arith.constant 0 : index
    %c0_5 = arith.constant 0 : index
    %c0_6 = arith.constant 0 : index
    %2 = vector.load %arg2[%c0_3, %c0_4, %c0_5, %c0_6] : memref<2x4x16x16xf32, #tpu.memory_space<vmem>>, vector<2x4x16x16xf32>
    %3 = vector.shape_cast %2 : vector<2x4x16x16xf32> to vector<128x16xf32>
    %4 = arith.mulf %1, %1 : vector<128x16xf32>
    %5 = arith.mulf %3, %3 : vector<128x16xf32>
    %6 = arith.mulf %1, %3 : vector<128x16xf32>
    %7 = tpu.concatenate %1, %3, %4, %5, %6 in 0 : vector<128x16xf32>, vector<128x16xf32>, vector<128x16xf32>, vector<128x16xf32>, vector<128x16xf32> -> vector<640x16xf32>
    %c0_7 = arith.constant 0 : index
    %c0_8 = arith.constant 0 : index
    %8 = vector.load %arg3[%c0_7, %c0_8] : memref<16x16xf32, #tpu.memory_space<vmem>>, vector<16x16xf32>
    %cst = arith.constant dense<0.000000e+00> : vector<640x16xf32>
    %9 = tpu.matmul %7, %8, %cst {dimension_numbers = #tpu.dot_dimension_numbers<[1], [0], [0], [1], [0, 0, 1, 1], [], []>} : vector<640x16xf32>, vector<16x16xf32>, vector<640x16xf32> -> vector<640x16xf32>
    %10 = vector.extract_strided_slice %9 {offsets = [0, 0], sizes = [128, 16], strides = [1, 1]} : vector<640x16xf32> to vector<128x16xf32>
    %11 = vector.extract_strided_slice %9 {offsets = [128, 0], sizes = [128, 16], strides = [1, 1]} : vector<640x16xf32> to vector<128x16xf32>
    %12 = vector.extract_strided_slice %9 {offsets = [256, 0], sizes = [128, 16], strides = [1, 1]} : vector<640x16xf32> to vector<128x16xf32>
    %13 = vector.extract_strided_slice %9 {offsets = [384, 0], sizes = [128, 16], strides = [1, 1]} : vector<640x16xf32> to vector<128x16xf32>
    %14 = vector.extract_strided_slice %9 {offsets = [512, 0], sizes = [128, 16], strides = [1, 1]} : vector<640x16xf32> to vector<128x16xf32>
    %15 = tpu.concatenate %10, %11, %12, %13, %14 in 1 : vector<128x16xf32>, vector<128x16xf32>, vector<128x16xf32>, vector<128x16xf32>, vector<128x16xf32> -> vector<128x80xf32>
    %c0_9 = arith.constant 0 : index
    %c0_10 = arith.constant 0 : index
    %16 = vector.load %arg4[%c0_9, %c0_10] : memref<16x16xf32, #tpu.memory_space<vmem>>, vector<16x16xf32>
    %17 = vector.extract_strided_slice %15 {offsets = [0, 0], sizes = [16, 80], strides = [1, 1]} : vector<128x80xf32> to vector<16x80xf32>
    %cst_11 = arith.constant dense<0.000000e+00> : vector<16x80xf32>
    %18 = tpu.matmul %16, %17, %cst_11 {dimension_numbers = #tpu.dot_dimension_numbers<[1], [0], [0], [1], [0, 0, 1, 1], [], []>} : vector<16x16xf32>, vector<16x80xf32>, vector<16x80xf32> -> vector<16x80xf32>
    %19 = vector.extract_strided_slice %18 {offsets = [0, 0], sizes = [16, 16], strides = [1, 1]} : vector<16x80xf32> to vector<16x16xf32>
    %20 = vector.extract_strided_slice %18 {offsets = [0, 16], sizes = [16, 16], strides = [1, 1]} : vector<16x80xf32> to vector<16x16xf32>
    %21 = arith.mulf %19, %19 : vector<16x16xf32>
    %22 = arith.mulf %20, %20 : vector<16x16xf32>
    %23 = arith.mulf %19, %20 : vector<16x16xf32>
    %24 = vector.extract_strided_slice %18 {offsets = [0, 32], sizes = [16, 16], strides = [1, 1]} : vector<16x80xf32> to vector<16x16xf32>
    %25 = arith.subf %24, %21 : vector<16x16xf32>
    %26 = vector.extract_strided_slice %18 {offsets = [0, 48], sizes = [16, 16], strides = [1, 1]} : vector<16x80xf32> to vector<16x16xf32>
    %27 = arith.subf %26, %22 : vector<16x16xf32>
    %28 = vector.extract_strided_slice %18 {offsets = [0, 64], sizes = [16, 16], strides = [1, 1]} : vector<16x80xf32> to vector<16x16xf32>
    %29 = arith.subf %28, %23 : vector<16x16xf32>
    %cst_12 = arith.constant 2.000000e+00 : f32
    %30 = vector.broadcast %cst_12 : f32 to vector<16x16xf32>
    %31 = arith.mulf %30, %23 : vector<16x16xf32>
    %cst_13 = arith.constant 9.99999974E-5 : f32
    %32 = vector.broadcast %cst_13 : f32 to vector<16x16xf32>
    %33 = arith.addf %31, %32 : vector<16x16xf32>
    %cst_14 = arith.constant 2.000000e+00 : f32
    %34 = vector.broadcast %cst_14 : f32 to vector<16x16xf32>
    %35 = arith.mulf %34, %29 : vector<16x16xf32>
    %cst_15 = arith.constant 8.99999984E-4 : f32
    %36 = vector.broadcast %cst_15 : f32 to vector<16x16xf32>
    %37 = arith.addf %35, %36 : vector<16x16xf32>
    %38 = arith.mulf %33, %37 : vector<16x16xf32>
    %39 = arith.addf %21, %22 : vector<16x16xf32>
    %cst_16 = arith.constant 9.99999974E-5 : f32
    %40 = vector.broadcast %cst_16 : f32 to vector<16x16xf32>
    %41 = arith.addf %39, %40 : vector<16x16xf32>
    %42 = arith.addf %25, %27 : vector<16x16xf32>
    %cst_17 = arith.constant 8.99999984E-4 : f32
    %43 = vector.broadcast %cst_17 : f32 to vector<16x16xf32>
    %44 = arith.addf %42, %43 : vector<16x16xf32>
    %45 = arith.mulf %41, %44 : vector<16x16xf32>
    %46 = tpu.reciprocal %45 {approx = true} : vector<16x16xf32> -> vector<16x16xf32>
    %47 = arith.mulf %45, %46 : vector<16x16xf32>
    %cst_18 = arith.constant 2.000000e+00 : f32
    %48 = vector.broadcast %cst_18 : f32 to vector<16x16xf32>
    %49 = arith.subf %48, %47 : vector<16x16xf32>
    %50 = arith.mulf %46, %49 : vector<16x16xf32>
    %51 = arith.mulf %38, %50 : vector<16x16xf32>
    %52 = vector.shape_cast %51 : vector<16x16xf32> to vector<1x16x16xf32>
    %cst_19 = arith.constant dense<0.000000e+00> : vector<1xf32>
    %53 = vector.multi_reduction <add>, %52, %cst_19 [1, 2] : vector<1x16x16xf32> to vector<1xf32>
    %54 = vector.shape_cast %53 : vector<1xf32> to vector<1x1x1xf32>
    %55 = vector.extract %54[0, 0, 0] : f32 from vector<1x1x1xf32>
    %cst_20 = arith.constant 0.000000e+00 : f32
    %56 = arith.addf %cst_20, %55 : f32
    %57 = vector.extract_strided_slice %15 {offsets = [16, 0], sizes = [16, 80], strides = [1, 1]} : vector<128x80xf32> to vector<16x80xf32>
    %cst_21 = arith.constant dense<0.000000e+00> : vector<16x80xf32>
    %58 = tpu.matmul %16, %57, %cst_21 {dimension_numbers = #tpu.dot_dimension_numbers<[1], [0], [0], [1], [0, 0, 1, 1], [], []>} : vector<16x16xf32>, vector<16x80xf32>, vector<16x80xf32> -> vector<16x80xf32>
    %59 = vector.extract_strided_slice %58 {offsets = [0, 0], sizes = [16, 16], strides = [1, 1]} : vector<16x80xf32> to vector<16x16xf32>
    %60 = vector.extract_strided_slice %58 {offsets = [0, 16], sizes = [16, 16], strides = [1, 1]} : vector<16x80xf32> to vector<16x16xf32>
    %61 = arith.mulf %59, %59 : vector<16x16xf32>
    %62 = arith.mulf %60, %60 : vector<16x16xf32>
    %63 = arith.mulf %59, %60 : vector<16x16xf32>
    %64 = vector.extract_strided_slice %58 {offsets = [0, 32], sizes = [16, 16], strides = [1, 1]} : vector<16x80xf32> to vector<16x16xf32>
    %65 = arith.subf %64, %61 : vector<16x16xf32>
    %66 = vector.extract_strided_slice %58 {offsets = [0, 48], sizes = [16, 16], strides = [1, 1]} : vector<16x80xf32> to vector<16x16xf32>
    %67 = arith.subf %66, %62 : vector<16x16xf32>
    %68 = vector.extract_strided_slice %58 {offsets = [0, 64], sizes = [16, 16], strides = [1, 1]} : vector<16x80xf32> to vector<16x16xf32>
    %69 = arith.subf %68, %63 : vector<16x16xf32>
    %cst_22 = arith.constant 2.000000e+00 : f32
    %70 = vector.broadcast %cst_22 : f32 to vector<16x16xf32>
    %71 = arith.mulf %70, %63 : vector<16x16xf32>
    %cst_23 = arith.constant 9.99999974E-5 : f32
    %72 = vector.broadcast %cst_23 : f32 to vector<16x16xf32>
    %73 = arith.addf %71, %72 : vector<16x16xf32>
    %cst_24 = arith.constant 2.000000e+00 : f32
    %74 = vector.broadcast %cst_24 : f32 to vector<16x16xf32>
    %75 = arith.mulf %74, %69 : vector<16x16xf32>
    %cst_25 = arith.constant 8.99999984E-4 : f32
    %76 = vector.broadcast %cst_25 : f32 to vector<16x16xf32>
    %77 = arith.addf %75, %76 : vector<16x16xf32>
    %78 = arith.mulf %73, %77 : vector<16x16xf32>
    %79 = arith.addf %61, %62 : vector<16x16xf32>
    %cst_26 = arith.constant 9.99999974E-5 : f32
    %80 = vector.broadcast %cst_26 : f32 to vector<16x16xf32>
    %81 = arith.addf %79, %80 : vector<16x16xf32>
    %82 = arith.addf %65, %67 : vector<16x16xf32>
    %cst_27 = arith.constant 8.99999984E-4 : f32
    %83 = vector.broadcast %cst_27 : f32 to vector<16x16xf32>
    %84 = arith.addf %82, %83 : vector<16x16xf32>
    %85 = arith.mulf %81, %84 : vector<16x16xf32>
    %86 = tpu.reciprocal %85 {approx = true} : vector<16x16xf32> -> vector<16x16xf32>
    %87 = arith.mulf %85, %86 : vector<16x16xf32>
    %cst_28 = arith.constant 2.000000e+00 : f32
    %88 = vector.broadcast %cst_28 : f32 to vector<16x16xf32>
    %89 = arith.subf %88, %87 : vector<16x16xf32>
    %90 = arith.mulf %86, %89 : vector<16x16xf32>
    %91 = arith.mulf %78, %90 : vector<16x16xf32>
    %92 = vector.shape_cast %91 : vector<16x16xf32> to vector<1x16x16xf32>
    %cst_29 = arith.constant dense<0.000000e+00> : vector<1xf32>
    %93 = vector.multi_reduction <add>, %92, %cst_29 [1, 2] : vector<1x16x16xf32> to vector<1xf32>
    %94 = vector.shape_cast %93 : vector<1xf32> to vector<1x1x1xf32>
    %95 = vector.extract %94[0, 0, 0] : f32 from vector<1x1x1xf32>
    %96 = arith.addf %56, %95 : f32
    %97 = vector.extract_strided_slice %15 {offsets = [32, 0], sizes = [16, 80], strides = [1, 1]} : vector<128x80xf32> to vector<16x80xf32>
    %cst_30 = arith.constant dense<0.000000e+00> : vector<16x80xf32>
    %98 = tpu.matmul %16, %97, %cst_30 {dimension_numbers = #tpu.dot_dimension_numbers<[1], [0], [0], [1], [0, 0, 1, 1], [], []>} : vector<16x16xf32>, vector<16x80xf32>, vector<16x80xf32> -> vector<16x80xf32>
    %99 = vector.extract_strided_slice %98 {offsets = [0, 0], sizes = [16, 16], strides = [1, 1]} : vector<16x80xf32> to vector<16x16xf32>
    %100 = vector.extract_strided_slice %98 {offsets = [0, 16], sizes = [16, 16], strides = [1, 1]} : vector<16x80xf32> to vector<16x16xf32>
    %101 = arith.mulf %99, %99 : vector<16x16xf32>
    %102 = arith.mulf %100, %100 : vector<16x16xf32>
    %103 = arith.mulf %99, %100 : vector<16x16xf32>
    %104 = vector.extract_strided_slice %98 {offsets = [0, 32], sizes = [16, 16], strides = [1, 1]} : vector<16x80xf32> to vector<16x16xf32>
    %105 = arith.subf %104, %101 : vector<16x16xf32>
    %106 = vector.extract_strided_slice %98 {offsets = [0, 48], sizes = [16, 16], strides = [1, 1]} : vector<16x80xf32> to vector<16x16xf32>
    %107 = arith.subf %106, %102 : vector<16x16xf32>
    %108 = vector.extract_strided_slice %98 {offsets = [0, 64], sizes = [16, 16], strides = [1, 1]} : vector<16x80xf32> to vector<16x16xf32>
    %109 = arith.subf %108, %103 : vector<16x16xf32>
    %cst_31 = arith.constant 2.000000e+00 : f32
    %110 = vector.broadcast %cst_31 : f32 to vector<16x16xf32>
    %111 = arith.mulf %110, %103 : vector<16x16xf32>
    %cst_32 = arith.constant 9.99999974E-5 : f32
    %112 = vector.broadcast %cst_32 : f32 to vector<16x16xf32>
    %113 = arith.addf %111, %112 : vector<16x16xf32>
    %cst_33 = arith.constant 2.000000e+00 : f32
    %114 = vector.broadcast %cst_33 : f32 to vector<16x16xf32>
    %115 = arith.mulf %114, %109 : vector<16x16xf32>
    %cst_34 = arith.constant 8.99999984E-4 : f32
    %116 = vector.broadcast %cst_34 : f32 to vector<16x16xf32>
    %117 = arith.addf %115, %116 : vector<16x16xf32>
    %118 = arith.mulf %113, %117 : vector<16x16xf32>
    %119 = arith.addf %101, %102 : vector<16x16xf32>
    %cst_35 = arith.constant 9.99999974E-5 : f32
    %120 = vector.broadcast %cst_35 : f32 to vector<16x16xf32>
    %121 = arith.addf %119, %120 : vector<16x16xf32>
    %122 = arith.addf %105, %107 : vector<16x16xf32>
    %cst_36 = arith.constant 8.99999984E-4 : f32
    %123 = vector.broadcast %cst_36 : f32 to vector<16x16xf32>
    %124 = arith.addf %122, %123 : vector<16x16xf32>
    %125 = arith.mulf %121, %124 : vector<16x16xf32>
    %126 = tpu.reciprocal %125 {approx = true} : vector<16x16xf32> -> vector<16x16xf32>
    %127 = arith.mulf %125, %126 : vector<16x16xf32>
    %cst_37 = arith.constant 2.000000e+00 : f32
    %128 = vector.broadcast %cst_37 : f32 to vector<16x16xf32>
    %129 = arith.subf %128, %127 : vector<16x16xf32>
    %130 = arith.mulf %126, %129 : vector<16x16xf32>
    %131 = arith.mulf %118, %130 : vector<16x16xf32>
    %132 = vector.shape_cast %131 : vector<16x16xf32> to vector<1x16x16xf32>
    %cst_38 = arith.constant dense<0.000000e+00> : vector<1xf32>
    %133 = vector.multi_reduction <add>, %132, %cst_38 [1, 2] : vector<1x16x16xf32> to vector<1xf32>
    %134 = vector.shape_cast %133 : vector<1xf32> to vector<1x1x1xf32>
    %135 = vector.extract %134[0, 0, 0] : f32 from vector<1x1x1xf32>
    %136 = arith.addf %96, %135 : f32
    %137 = vector.extract_strided_slice %15 {offsets = [48, 0], sizes = [16, 80], strides = [1, 1]} : vector<128x80xf32> to vector<16x80xf32>
    %cst_39 = arith.constant dense<0.000000e+00> : vector<16x80xf32>
    %138 = tpu.matmul %16, %137, %cst_39 {dimension_numbers = #tpu.dot_dimension_numbers<[1], [0], [0], [1], [0, 0, 1, 1], [], []>} : vector<16x16xf32>, vector<16x80xf32>, vector<16x80xf32> -> vector<16x80xf32>
    %139 = vector.extract_strided_slice %138 {offsets = [0, 0], sizes = [16, 16], strides = [1, 1]} : vector<16x80xf32> to vector<16x16xf32>
    %140 = vector.extract_strided_slice %138 {offsets = [0, 16], sizes = [16, 16], strides = [1, 1]} : vector<16x80xf32> to vector<16x16xf32>
    %141 = arith.mulf %139, %139 : vector<16x16xf32>
    %142 = arith.mulf %140, %140 : vector<16x16xf32>
    %143 = arith.mulf %139, %140 : vector<16x16xf32>
    %144 = vector.extract_strided_slice %138 {offsets = [0, 32], sizes = [16, 16], strides = [1, 1]} : vector<16x80xf32> to vector<16x16xf32>
    %145 = arith.subf %144, %141 : vector<16x16xf32>
    %146 = vector.extract_strided_slice %138 {offsets = [0, 48], sizes = [16, 16], strides = [1, 1]} : vector<16x80xf32> to vector<16x16xf32>
    %147 = arith.subf %146, %142 : vector<16x16xf32>
    %148 = vector.extract_strided_slice %138 {offsets = [0, 64], sizes = [16, 16], strides = [1, 1]} : vector<16x80xf32> to vector<16x16xf32>
    %149 = arith.subf %148, %143 : vector<16x16xf32>
    %cst_40 = arith.constant 2.000000e+00 : f32
    %150 = vector.broadcast %cst_40 : f32 to vector<16x16xf32>
    %151 = arith.mulf %150, %143 : vector<16x16xf32>
    %cst_41 = arith.constant 9.99999974E-5 : f32
    %152 = vector.broadcast %cst_41 : f32 to vector<16x16xf32>
    %153 = arith.addf %151, %152 : vector<16x16xf32>
    %cst_42 = arith.constant 2.000000e+00 : f32
    %154 = vector.broadcast %cst_42 : f32 to vector<16x16xf32>
    %155 = arith.mulf %154, %149 : vector<16x16xf32>
    %cst_43 = arith.constant 8.99999984E-4 : f32
    %156 = vector.broadcast %cst_43 : f32 to vector<16x16xf32>
    %157 = arith.addf %155, %156 : vector<16x16xf32>
    %158 = arith.mulf %153, %157 : vector<16x16xf32>
    %159 = arith.addf %141, %142 : vector<16x16xf32>
    %cst_44 = arith.constant 9.99999974E-5 : f32
    %160 = vector.broadcast %cst_44 : f32 to vector<16x16xf32>
    %161 = arith.addf %159, %160 : vector<16x16xf32>
    %162 = arith.addf %145, %147 : vector<16x16xf32>
    %cst_45 = arith.constant 8.99999984E-4 : f32
    %163 = vector.broadcast %cst_45 : f32 to vector<16x16xf32>
    %164 = arith.addf %162, %163 : vector<16x16xf32>
    %165 = arith.mulf %161, %164 : vector<16x16xf32>
    %166 = tpu.reciprocal %165 {approx = true} : vector<16x16xf32> -> vector<16x16xf32>
    %167 = arith.mulf %165, %166 : vector<16x16xf32>
    %cst_46 = arith.constant 2.000000e+00 : f32
    %168 = vector.broadcast %cst_46 : f32 to vector<16x16xf32>
    %169 = arith.subf %168, %167 : vector<16x16xf32>
    %170 = arith.mulf %166, %169 : vector<16x16xf32>
    %171 = arith.mulf %158, %170 : vector<16x16xf32>
    %172 = vector.shape_cast %171 : vector<16x16xf32> to vector<1x16x16xf32>
    %cst_47 = arith.constant dense<0.000000e+00> : vector<1xf32>
    %173 = vector.multi_reduction <add>, %172, %cst_47 [1, 2] : vector<1x16x16xf32> to vector<1xf32>
    %174 = vector.shape_cast %173 : vector<1xf32> to vector<1x1x1xf32>
    %175 = vector.extract %174[0, 0, 0] : f32 from vector<1x1x1xf32>
    %176 = arith.addf %136, %175 : f32
    %177 = vector.extract_strided_slice %15 {offsets = [64, 0], sizes = [16, 80], strides = [1, 1]} : vector<128x80xf32> to vector<16x80xf32>
    %cst_48 = arith.constant dense<0.000000e+00> : vector<16x80xf32>
    %178 = tpu.matmul %16, %177, %cst_48 {dimension_numbers = #tpu.dot_dimension_numbers<[1], [0], [0], [1], [0, 0, 1, 1], [], []>} : vector<16x16xf32>, vector<16x80xf32>, vector<16x80xf32> -> vector<16x80xf32>
    %179 = vector.extract_strided_slice %178 {offsets = [0, 0], sizes = [16, 16], strides = [1, 1]} : vector<16x80xf32> to vector<16x16xf32>
    %180 = vector.extract_strided_slice %178 {offsets = [0, 16], sizes = [16, 16], strides = [1, 1]} : vector<16x80xf32> to vector<16x16xf32>
    %181 = arith.mulf %179, %179 : vector<16x16xf32>
    %182 = arith.mulf %180, %180 : vector<16x16xf32>
    %183 = arith.mulf %179, %180 : vector<16x16xf32>
    %184 = vector.extract_strided_slice %178 {offsets = [0, 32], sizes = [16, 16], strides = [1, 1]} : vector<16x80xf32> to vector<16x16xf32>
    %185 = arith.subf %184, %181 : vector<16x16xf32>
    %186 = vector.extract_strided_slice %178 {offsets = [0, 48], sizes = [16, 16], strides = [1, 1]} : vector<16x80xf32> to vector<16x16xf32>
    %187 = arith.subf %186, %182 : vector<16x16xf32>
    %188 = vector.extract_strided_slice %178 {offsets = [0, 64], sizes = [16, 16], strides = [1, 1]} : vector<16x80xf32> to vector<16x16xf32>
    %189 = arith.subf %188, %183 : vector<16x16xf32>
    %cst_49 = arith.constant 2.000000e+00 : f32
    %190 = vector.broadcast %cst_49 : f32 to vector<16x16xf32>
    %191 = arith.mulf %190, %183 : vector<16x16xf32>
    %cst_50 = arith.constant 9.99999974E-5 : f32
    %192 = vector.broadcast %cst_50 : f32 to vector<16x16xf32>
    %193 = arith.addf %191, %192 : vector<16x16xf32>
    %cst_51 = arith.constant 2.000000e+00 : f32
    %194 = vector.broadcast %cst_51 : f32 to vector<16x16xf32>
    %195 = arith.mulf %194, %189 : vector<16x16xf32>
    %cst_52 = arith.constant 8.99999984E-4 : f32
    %196 = vector.broadcast %cst_52 : f32 to vector<16x16xf32>
    %197 = arith.addf %195, %196 : vector<16x16xf32>
    %198 = arith.mulf %193, %197 : vector<16x16xf32>
    %199 = arith.addf %181, %182 : vector<16x16xf32>
    %cst_53 = arith.constant 9.99999974E-5 : f32
    %200 = vector.broadcast %cst_53 : f32 to vector<16x16xf32>
    %201 = arith.addf %199, %200 : vector<16x16xf32>
    %202 = arith.addf %185, %187 : vector<16x16xf32>
    %cst_54 = arith.constant 8.99999984E-4 : f32
    %203 = vector.broadcast %cst_54 : f32 to vector<16x16xf32>
    %204 = arith.addf %202, %203 : vector<16x16xf32>
    %205 = arith.mulf %201, %204 : vector<16x16xf32>
    %206 = tpu.reciprocal %205 {approx = true} : vector<16x16xf32> -> vector<16x16xf32>
    %207 = arith.mulf %205, %206 : vector<16x16xf32>
    %cst_55 = arith.constant 2.000000e+00 : f32
    %208 = vector.broadcast %cst_55 : f32 to vector<16x16xf32>
    %209 = arith.subf %208, %207 : vector<16x16xf32>
    %210 = arith.mulf %206, %209 : vector<16x16xf32>
    %211 = arith.mulf %198, %210 : vector<16x16xf32>
    %212 = vector.shape_cast %211 : vector<16x16xf32> to vector<1x16x16xf32>
    %cst_56 = arith.constant dense<0.000000e+00> : vector<1xf32>
    %213 = vector.multi_reduction <add>, %212, %cst_56 [1, 2] : vector<1x16x16xf32> to vector<1xf32>
    %214 = vector.shape_cast %213 : vector<1xf32> to vector<1x1x1xf32>
    %215 = vector.extract %214[0, 0, 0] : f32 from vector<1x1x1xf32>
    %cst_57 = arith.constant 0.000000e+00 : f32
    %216 = arith.addf %cst_57, %215 : f32
    %217 = vector.extract_strided_slice %15 {offsets = [80, 0], sizes = [16, 80], strides = [1, 1]} : vector<128x80xf32> to vector<16x80xf32>
    %cst_58 = arith.constant dense<0.000000e+00> : vector<16x80xf32>
    %218 = tpu.matmul %16, %217, %cst_58 {dimension_numbers = #tpu.dot_dimension_numbers<[1], [0], [0], [1], [0, 0, 1, 1], [], []>} : vector<16x16xf32>, vector<16x80xf32>, vector<16x80xf32> -> vector<16x80xf32>
    %219 = vector.extract_strided_slice %218 {offsets = [0, 0], sizes = [16, 16], strides = [1, 1]} : vector<16x80xf32> to vector<16x16xf32>
    %220 = vector.extract_strided_slice %218 {offsets = [0, 16], sizes = [16, 16], strides = [1, 1]} : vector<16x80xf32> to vector<16x16xf32>
    %221 = arith.mulf %219, %219 : vector<16x16xf32>
    %222 = arith.mulf %220, %220 : vector<16x16xf32>
    %223 = arith.mulf %219, %220 : vector<16x16xf32>
    %224 = vector.extract_strided_slice %218 {offsets = [0, 32], sizes = [16, 16], strides = [1, 1]} : vector<16x80xf32> to vector<16x16xf32>
    %225 = arith.subf %224, %221 : vector<16x16xf32>
    %226 = vector.extract_strided_slice %218 {offsets = [0, 48], sizes = [16, 16], strides = [1, 1]} : vector<16x80xf32> to vector<16x16xf32>
    %227 = arith.subf %226, %222 : vector<16x16xf32>
    %228 = vector.extract_strided_slice %218 {offsets = [0, 64], sizes = [16, 16], strides = [1, 1]} : vector<16x80xf32> to vector<16x16xf32>
    %229 = arith.subf %228, %223 : vector<16x16xf32>
    %cst_59 = arith.constant 2.000000e+00 : f32
    %230 = vector.broadcast %cst_59 : f32 to vector<16x16xf32>
    %231 = arith.mulf %230, %223 : vector<16x16xf32>
    %cst_60 = arith.constant 9.99999974E-5 : f32
    %232 = vector.broadcast %cst_60 : f32 to vector<16x16xf32>
    %233 = arith.addf %231, %232 : vector<16x16xf32>
    %cst_61 = arith.constant 2.000000e+00 : f32
    %234 = vector.broadcast %cst_61 : f32 to vector<16x16xf32>
    %235 = arith.mulf %234, %229 : vector<16x16xf32>
    %cst_62 = arith.constant 8.99999984E-4 : f32
    %236 = vector.broadcast %cst_62 : f32 to vector<16x16xf32>
    %237 = arith.addf %235, %236 : vector<16x16xf32>
    %238 = arith.mulf %233, %237 : vector<16x16xf32>
    %239 = arith.addf %221, %222 : vector<16x16xf32>
    %cst_63 = arith.constant 9.99999974E-5 : f32
    %240 = vector.broadcast %cst_63 : f32 to vector<16x16xf32>
    %241 = arith.addf %239, %240 : vector<16x16xf32>
    %242 = arith.addf %225, %227 : vector<16x16xf32>
    %cst_64 = arith.constant 8.99999984E-4 : f32
    %243 = vector.broadcast %cst_64 : f32 to vector<16x16xf32>
    %244 = arith.addf %242, %243 : vector<16x16xf32>
    %245 = arith.mulf %241, %244 : vector<16x16xf32>
    %246 = tpu.reciprocal %245 {approx = true} : vector<16x16xf32> -> vector<16x16xf32>
    %247 = arith.mulf %245, %246 : vector<16x16xf32>
    %cst_65 = arith.constant 2.000000e+00 : f32
    %248 = vector.broadcast %cst_65 : f32 to vector<16x16xf32>
    %249 = arith.subf %248, %247 : vector<16x16xf32>
    %250 = arith.mulf %246, %249 : vector<16x16xf32>
    %251 = arith.mulf %238, %250 : vector<16x16xf32>
    %252 = vector.shape_cast %251 : vector<16x16xf32> to vector<1x16x16xf32>
    %cst_66 = arith.constant dense<0.000000e+00> : vector<1xf32>
    %253 = vector.multi_reduction <add>, %252, %cst_66 [1, 2] : vector<1x16x16xf32> to vector<1xf32>
    %254 = vector.shape_cast %253 : vector<1xf32> to vector<1x1x1xf32>
    %255 = vector.extract %254[0, 0, 0] : f32 from vector<1x1x1xf32>
    %256 = arith.addf %216, %255 : f32
    %257 = vector.extract_strided_slice %15 {offsets = [96, 0], sizes = [16, 80], strides = [1, 1]} : vector<128x80xf32> to vector<16x80xf32>
    %cst_67 = arith.constant dense<0.000000e+00> : vector<16x80xf32>
    %258 = tpu.matmul %16, %257, %cst_67 {dimension_numbers = #tpu.dot_dimension_numbers<[1], [0], [0], [1], [0, 0, 1, 1], [], []>} : vector<16x16xf32>, vector<16x80xf32>, vector<16x80xf32> -> vector<16x80xf32>
    %259 = vector.extract_strided_slice %258 {offsets = [0, 0], sizes = [16, 16], strides = [1, 1]} : vector<16x80xf32> to vector<16x16xf32>
    %260 = vector.extract_strided_slice %258 {offsets = [0, 16], sizes = [16, 16], strides = [1, 1]} : vector<16x80xf32> to vector<16x16xf32>
    %261 = arith.mulf %259, %259 : vector<16x16xf32>
    %262 = arith.mulf %260, %260 : vector<16x16xf32>
    %263 = arith.mulf %259, %260 : vector<16x16xf32>
    %264 = vector.extract_strided_slice %258 {offsets = [0, 32], sizes = [16, 16], strides = [1, 1]} : vector<16x80xf32> to vector<16x16xf32>
    %265 = arith.subf %264, %261 : vector<16x16xf32>
    %266 = vector.extract_strided_slice %258 {offsets = [0, 48], sizes = [16, 16], strides = [1, 1]} : vector<16x80xf32> to vector<16x16xf32>
    %267 = arith.subf %266, %262 : vector<16x16xf32>
    %268 = vector.extract_strided_slice %258 {offsets = [0, 64], sizes = [16, 16], strides = [1, 1]} : vector<16x80xf32> to vector<16x16xf32>
    %269 = arith.subf %268, %263 : vector<16x16xf32>
    %cst_68 = arith.constant 2.000000e+00 : f32
    %270 = vector.broadcast %cst_68 : f32 to vector<16x16xf32>
    %271 = arith.mulf %270, %263 : vector<16x16xf32>
    %cst_69 = arith.constant 9.99999974E-5 : f32
    %272 = vector.broadcast %cst_69 : f32 to vector<16x16xf32>
    %273 = arith.addf %271, %272 : vector<16x16xf32>
    %cst_70 = arith.constant 2.000000e+00 : f32
    %274 = vector.broadcast %cst_70 : f32 to vector<16x16xf32>
    %275 = arith.mulf %274, %269 : vector<16x16xf32>
    %cst_71 = arith.constant 8.99999984E-4 : f32
    %276 = vector.broadcast %cst_71 : f32 to vector<16x16xf32>
    %277 = arith.addf %275, %276 : vector<16x16xf32>
    %278 = arith.mulf %273, %277 : vector<16x16xf32>
    %279 = arith.addf %261, %262 : vector<16x16xf32>
    %cst_72 = arith.constant 9.99999974E-5 : f32
    %280 = vector.broadcast %cst_72 : f32 to vector<16x16xf32>
    %281 = arith.addf %279, %280 : vector<16x16xf32>
    %282 = arith.addf %265, %267 : vector<16x16xf32>
    %cst_73 = arith.constant 8.99999984E-4 : f32
    %283 = vector.broadcast %cst_73 : f32 to vector<16x16xf32>
    %284 = arith.addf %282, %283 : vector<16x16xf32>
    %285 = arith.mulf %281, %284 : vector<16x16xf32>
    %286 = tpu.reciprocal %285 {approx = true} : vector<16x16xf32> -> vector<16x16xf32>
    %287 = arith.mulf %285, %286 : vector<16x16xf32>
    %cst_74 = arith.constant 2.000000e+00 : f32
    %288 = vector.broadcast %cst_74 : f32 to vector<16x16xf32>
    %289 = arith.subf %288, %287 : vector<16x16xf32>
    %290 = arith.mulf %286, %289 : vector<16x16xf32>
    %291 = arith.mulf %278, %290 : vector<16x16xf32>
    %292 = vector.shape_cast %291 : vector<16x16xf32> to vector<1x16x16xf32>
    %cst_75 = arith.constant dense<0.000000e+00> : vector<1xf32>
    %293 = vector.multi_reduction <add>, %292, %cst_75 [1, 2] : vector<1x16x16xf32> to vector<1xf32>
    %294 = vector.shape_cast %293 : vector<1xf32> to vector<1x1x1xf32>
    %295 = vector.extract %294[0, 0, 0] : f32 from vector<1x1x1xf32>
    %296 = arith.addf %256, %295 : f32
    %297 = vector.extract_strided_slice %15 {offsets = [112, 0], sizes = [16, 80], strides = [1, 1]} : vector<128x80xf32> to vector<16x80xf32>
    %cst_76 = arith.constant dense<0.000000e+00> : vector<16x80xf32>
    %298 = tpu.matmul %16, %297, %cst_76 {dimension_numbers = #tpu.dot_dimension_numbers<[1], [0], [0], [1], [0, 0, 1, 1], [], []>} : vector<16x16xf32>, vector<16x80xf32>, vector<16x80xf32> -> vector<16x80xf32>
    %299 = vector.extract_strided_slice %298 {offsets = [0, 0], sizes = [16, 16], strides = [1, 1]} : vector<16x80xf32> to vector<16x16xf32>
    %300 = vector.extract_strided_slice %298 {offsets = [0, 16], sizes = [16, 16], strides = [1, 1]} : vector<16x80xf32> to vector<16x16xf32>
    %301 = arith.mulf %299, %299 : vector<16x16xf32>
    %302 = arith.mulf %300, %300 : vector<16x16xf32>
    %303 = arith.mulf %299, %300 : vector<16x16xf32>
    %304 = vector.extract_strided_slice %298 {offsets = [0, 32], sizes = [16, 16], strides = [1, 1]} : vector<16x80xf32> to vector<16x16xf32>
    %305 = arith.subf %304, %301 : vector<16x16xf32>
    %306 = vector.extract_strided_slice %298 {offsets = [0, 48], sizes = [16, 16], strides = [1, 1]} : vector<16x80xf32> to vector<16x16xf32>
    %307 = arith.subf %306, %302 : vector<16x16xf32>
    %308 = vector.extract_strided_slice %298 {offsets = [0, 64], sizes = [16, 16], strides = [1, 1]} : vector<16x80xf32> to vector<16x16xf32>
    %309 = arith.subf %308, %303 : vector<16x16xf32>
    %cst_77 = arith.constant 2.000000e+00 : f32
    %310 = vector.broadcast %cst_77 : f32 to vector<16x16xf32>
    %311 = arith.mulf %310, %303 : vector<16x16xf32>
    %cst_78 = arith.constant 9.99999974E-5 : f32
    %312 = vector.broadcast %cst_78 : f32 to vector<16x16xf32>
    %313 = arith.addf %311, %312 : vector<16x16xf32>
    %cst_79 = arith.constant 2.000000e+00 : f32
    %314 = vector.broadcast %cst_79 : f32 to vector<16x16xf32>
    %315 = arith.mulf %314, %309 : vector<16x16xf32>
    %cst_80 = arith.constant 8.99999984E-4 : f32
    %316 = vector.broadcast %cst_80 : f32 to vector<16x16xf32>
    %317 = arith.addf %315, %316 : vector<16x16xf32>
    %318 = arith.mulf %313, %317 : vector<16x16xf32>
    %319 = arith.addf %301, %302 : vector<16x16xf32>
    %cst_81 = arith.constant 9.99999974E-5 : f32
    %320 = vector.broadcast %cst_81 : f32 to vector<16x16xf32>
    %321 = arith.addf %319, %320 : vector<16x16xf32>
    %322 = arith.addf %305, %307 : vector<16x16xf32>
    %cst_82 = arith.constant 8.99999984E-4 : f32
    %323 = vector.broadcast %cst_82 : f32 to vector<16x16xf32>
    %324 = arith.addf %322, %323 : vector<16x16xf32>
    %325 = arith.mulf %321, %324 : vector<16x16xf32>
    %326 = tpu.reciprocal %325 {approx = true} : vector<16x16xf32> -> vector<16x16xf32>
    %327 = arith.mulf %325, %326 : vector<16x16xf32>
    %cst_83 = arith.constant 2.000000e+00 : f32
    %328 = vector.broadcast %cst_83 : f32 to vector<16x16xf32>
    %329 = arith.subf %328, %327 : vector<16x16xf32>
    %330 = arith.mulf %326, %329 : vector<16x16xf32>
    %331 = arith.mulf %318, %330 : vector<16x16xf32>
    %332 = vector.shape_cast %331 : vector<16x16xf32> to vector<1x16x16xf32>
    %cst_84 = arith.constant dense<0.000000e+00> : vector<1xf32>
    %333 = vector.multi_reduction <add>, %332, %cst_84 [1, 2] : vector<1x16x16xf32> to vector<1xf32>
    %334 = vector.shape_cast %333 : vector<1xf32> to vector<1x1x1xf32>
    %335 = vector.extract %334[0, 0, 0] : f32 from vector<1x1x1xf32>
    %336 = arith.addf %296, %335 : f32
    %cst_85 = arith.constant 9.765625E-4 : f32
    %337 = arith.mulf %176, %cst_85 : f32
    %338 = vector.broadcast %337 : f32 to vector<1x1x1xf32>
    %c0_86 = arith.constant 0 : index
    %c0_87 = arith.constant 0 : index
    %c0_88 = arith.constant 0 : index
    %339 = vector.load %arg5[%c0_86, %c0_87, %c0_88] : memref<2x1x1xf32, #tpu.memory_space<vmem>>, vector<1x1x1xf32>
    tpu.vector_store %arg5[%c0_86, %c0_87, %c0_88], %338 {strides = array<i32>} : memref<2x1x1xf32, #tpu.memory_space<vmem>>, vector<1x1x1xf32>,
    %cst_89 = arith.constant 9.765625E-4 : f32
    %340 = arith.mulf %336, %cst_89 : f32
    %341 = vector.broadcast %340 : f32 to vector<1x1x1xf32>
    %c1 = arith.constant 1 : index
    %c0_90 = arith.constant 0 : index
    %c0_91 = arith.constant 0 : index
    %342 = vector.load %arg5[%c1, %c0_90, %c0_91] : memref<2x1x1xf32, #tpu.memory_space<vmem>>, vector<1x1x1xf32>
    tpu.vector_store %arg5[%c1, %c0_90, %c0_91], %341 {strides = array<i32>} : memref<2x1x1xf32, #tpu.memory_space<vmem>>, vector<1x1x1xf32>,
    return
  }
  func.func @transform_0(%arg0: i32) -> (i32, i32, i32, i32) {
    %c0_i32 = arith.constant 0 : i32
    %c0_i32_0 = arith.constant 0 : i32
    %c0_i32_1 = arith.constant 0 : i32
    %c0_i32_2 = arith.constant 0 : i32
    return %arg0, %c0_i32, %c0_i32_0, %c0_i32_1 : i32, i32, i32, i32
  }
  func.func @transform_1(%arg0: i32) -> (i32, i32, i32, i32) {
    %c0_i32 = arith.constant 0 : i32
    %c0_i32_0 = arith.constant 0 : i32
    %c0_i32_1 = arith.constant 0 : i32
    %c0_i32_2 = arith.constant 0 : i32
    return %arg0, %c0_i32, %c0_i32_0, %c0_i32_1 : i32, i32, i32, i32
  }
  func.func @transform_2(%arg0: i32) -> (i32, i32) {
    %c0_i32 = arith.constant 0 : i32
    %c0_i32_0 = arith.constant 0 : i32
    %c0_i32_1 = arith.constant 0 : i32
    return %c0_i32, %c0_i32_0 : i32, i32
  }
  func.func @transform_3(%arg0: i32) -> (i32, i32) {
    %c0_i32 = arith.constant 0 : i32
    %c0_i32_0 = arith.constant 0 : i32
    %c0_i32_1 = arith.constant 0 : i32
    return %c0_i32, %c0_i32_0 : i32, i32
  }
  func.func @transform_4(%arg0: i32) -> (i32, i32, i32) {
    %c0_i32 = arith.constant 0 : i32
    %c0_i32_0 = arith.constant 0 : i32
    %c0_i32_1 = arith.constant 0 : i32
    return %arg0, %c0_i32, %c0_i32_0 : i32, i32, i32
  }
}

</mosaic_0001>

<bundles_post_ra>
// kernel: tpu_custom_call.1
= control target key start
LH: loop header
LB: loop body
LE: loop exit
PB: predicated region body
PF: predicated region fallthrough
CT: control target
= control target key end

     0   :  { %9 = vsyncpa [#allocation3], 0  ;;  %s3572_s0 = inlined_call_operand.hbm [shape: f32[2,4,16,16], index: 0, kind: input, shape index: {}]   ;;  %s3573_s1 = inlined_call_operand.hbm [shape: f32[2,4,16,16], index: 1, kind: input, shape index: {}]   ;;  %s3574_s2 = inlined_call_operand.hbm [shape: f32[16,16], index: 2, kind: input, shape index: {}]   ;;  %s3575_s3 = inlined_call_operand.hbm [shape: f32[16,16], index: 3, kind: input, shape index: {}]   ;;  %s3576_s4 = inlined_call_operand.vmem [shape: f32[2,1,1], index: 4, kind: output, shape index: {}]  }
   0x1   :  { %10 = vsyncpa [#allocation5], 0 }
   0x2   :  { %11 = vsyncpa [#allocation8], 0  ;;  %s29_s17 = sshll.u32 %s3573_s1, 4  ;;  %s2455_s18 = smov [#allocation4]   ;;  %s30_s17 = int_to_ptr.hbm [resolvable:$true] %s29_s17 }
   0x3   :  { %s31_s19 = sshll.u32 %s2455_s18, 4  ;;  %s16_s22 = sshll.u32 %s3572_s0, 4  ;;  %s32_s19 = int_to_ptr.vmem [resolvable:$true] %s31_s19  ;;  %s17_s22 = int_to_ptr.hbm [resolvable:$true] %s16_s22 }
   0x4   :  { %s2456_s23 = smov 128   ;;  %s2457_s24 = smov 8  }
   0x5   :  { %37 = dma.hbm_to_vmem [thread:$0]  %s30_s17, 2048, %s32_s19, [#allocation5], %s2456_s23, %s2456_s23, %s2457_s24  }
   0x6   :  { %s2458_s25 = smov [#allocation2]   ;;  %s42_s29 = sshll.u32 %s3574_s2, 4  ;;  %s43_s29 = int_to_ptr.hbm [resolvable:$true] %s42_s29 }
   0x7   :  { %s18_s26 = sshll.u32 %s2458_s25, 4  ;;  %s55_s5 = sshll.u32 %s3575_s3, 4  ;;  %s19_s26 = int_to_ptr.vmem [resolvable:$true] %s18_s26  ;;  %s56_s5 = int_to_ptr.hbm [resolvable:$true] %s55_s5 }
   0x8   :  { %24 = dma.hbm_to_vmem [thread:$0]  %s17_s22, 2048, %s19_s26, [#allocation3], %s2456_s23, %s2456_s23, %s2457_s24  }
   0x9   :  { %s2459_s6 = smov [#allocation6]   ;;  %s2460_s0 = smov [#allocation7]  }
   0xa   :  { %s44_s7 = sshll.u32 %s2459_s6, 4  ;;  %s57_s8 = sshll.u32 %s2460_s0, 4  ;;  %s45_s7 = int_to_ptr.vmem [resolvable:$true] %s44_s7  ;;  %s58_s8 = int_to_ptr.vmem [resolvable:$true] %s57_s8 }
   0xb   :  { %50 = dma.hbm_to_vmem [thread:$0]  %s43_s29, 256, %s45_s7, [#allocation5], %s2456_s23, %s2456_s23, %s2457_s24  }
   0xc   :  { %63 = dma.hbm_to_vmem [thread:$0]  %s56_s5, 256, %s58_s8, [#allocation8], %s2456_s23, %s2456_s23, %s2457_s24  }
   0xd   :  { %2449 = dma.done.wait [#allocation3], 2048  }
   0xe   :  { %2450 = vsyncadd [#allocation3], 4294965248 }
   0xf   :  { %2451 = dma.done.wait [#allocation5], 2304  }
  0x10   :  { %2452 = vsyncadd [#allocation5], 4294964992 }
  0x11   :  { %2453 = dma.done.wait [#allocation8], 256  }
  0x12   :  { %2454 = vsyncadd [#allocation8], 4294967040  ;;  %v161_v0 = vld [vmem:[#allocation6 + $0x8] sm:$0xff]  ;;  %v160_v1 = vld [vmem:[#allocation6] sm:$0xff]  ;;  %vm162_vm0 = vcmask 130048   ;;  %s2461_s2 = smov 16  }
  0x13   :  { %417 = vmatpush.msra.mxu0 %v161_v0  ;;  %2127 = vmatpush.msra.mxu1 %v161_v0  ;;  %v2504_v2 = vld [vmem:[#allocation2 + $0x50] sm:$0xff]  ;;  %v2506_v3 = vld [vmem:[#allocation4 + $0x60] sm:$0xff]  ;;  %v2522_v8 = vld [vmem:[#allocation2 + $0x58] sm:$0xff]  ;;  %s2462_s3 = smov 32   ;;  %s2463_s9 = smov 48   ;;  %vm932_vm1 = vcmask 261120  }
  0x14   :  { %2128 = vmatpush.msra.mxu2 %v161_v0  ;;  %2129 = vmatpush.msra.mxu3 %v161_v0  ;;  %v2508_v4 = vld [vmem:[#allocation2] sm:$0xff]  ;;  %v122_v6 = vmul.f32 %v2504_v2, %v2504_v2  ;;  %v140_v7 = vmul.f32 %v2506_v3, %v2506_v3  ;;  %v2524_v9 = vld [vmem:[#allocation4 + $0x68] sm:$0xff]  ;;  %v123_v12 = vmul.f32 %v2522_v8, %v2522_v8  ;;  %v2540_v14 = vld [vmem:[#allocation4 + $0x70] sm:$0xff]  ;;  %s2464_s10 = smov 64   ;;  %vm949_vm2 = vcmask 392192   ;;  %s2465_s11 = smov 112  }
  0x15   :  { %v2510_v5 = vld [vmem:[#allocation4 + $0x40] sm:$0xff]  ;;  %418 = vmatpush.msra.mxu0 %v160_v1  ;;  %2130 = vmatpush.msra.mxu1 %v160_v1  ;;  %v2526_v10 = vld [vmem:[#allocation2 + $0x8] sm:$0xff]  ;;  %v141_v13 = vmul.f32 %v2524_v9, %v2524_v9  ;;  %v2544_v16 = vld [vmem:[#allocation2 + $0x10] sm:$0xff]  ;;  %v142_v18 = vmul.f32 %v2540_v14, %v2540_v14  ;;  %v112_v45 = vmul.f32 %v2508_v4, %v2508_v4  ;;  %vm966_vm3 = vcmask 523264   ;;  %s2466_s12 = smov 96  }
  0x16   :  { %2131 = vmatpush.msra.mxu2 %v160_v1  ;;  %2132 = vmatpush.msra.mxu3 %v160_v1  ;;  %v2528_v11 = vld [vmem:[#allocation4 + $0x48] sm:$0xff]  ;;  %v2542_v15 = vld [vmem:[#allocation2 + $0x60] sm:$0xff]  ;;  %v2546_v17 = vld [vmem:[#allocation4 + $0x50] sm:$0xff]  ;;  %v113_v50 = vmul.f32 %v2526_v10, %v2526_v10  ;;  %v114_v55 = vmul.f32 %v2544_v16, %v2544_v16  ;;  %vm2017_vm4 = vcmask 0  }
  0x17   :  { %2030 = vmatmul.msk.f32.vlgmr.msra.gmra.mxu0 %vm162_vm0, %v2508_v4  ;;  %2054 = vmatmul.msk.f32.vlgmr.msra.gmra.mxu1 %vm162_vm0, %v2510_v5  ;;  %v124_v19 = vmul.f32 %v2542_v15, %v2542_v15  ;;  %v2558_v20 = vld [vmem:[#allocation4 + $0x78] sm:$0xff]  ;;  %v2560_v21 = vld [vmem:[#allocation2 + $0x68] sm:$0xff]  ;;  %v2576_v26 = vld [vmem:[#allocation4] sm:$0xff] }
  0x18   :  { %2072 = vmatmul.msk.f32.vlgmr.msra.gmra.mxu2 %vm162_vm0, %v122_v6  ;;  %2090 = vmatmul.msk.f32.vlgmr.msra.gmra.mxu3 %vm162_vm0, %v140_v7  ;;  %v2562_v22 = vld [vmem:[#allocation2 + $0x18] sm:$0xff]  ;;  %v143_v24 = vmul.f32 %v2558_v20, %v2558_v20  ;;  %v125_v25 = vmul.f32 %v2560_v21, %v2560_v21  ;;  %v2578_v27 = vld [vmem:[#allocation2 + $0x70] sm:$0xff]  ;;  %v2580_v28 = vld [vmem:[#allocation2 + $0x20] sm:$0xff]  ;;  %v144_v29 = vmul.f32 %v2576_v26, %v2508_v4 }
  0x19   :  { %v2564_v23 = vld [vmem:[#allocation4 + $0x58] sm:$0xff]  ;;  %v126_v30 = vmul.f32 %v2578_v27, %v2578_v27  ;;  %v2592_v31 = vld [vmem:[#allocation4 + $0x8] sm:$0xff]  ;;  %v2608_v36 = vld [vmem:[#allocation4 + $0x10] sm:$0xff]  ;;  %v128_v39 = vmul.f32 %v2576_v26, %v2576_v26  ;;  %v115_v59 = vmul.f32 %v2562_v22, %v2562_v22  ;;  %v116_v62 = vmul.f32 %v2580_v28, %v2580_v28 }
  0x1a   :  { %v2594_v32 = vld [vmem:[#allocation2 + $0x78] sm:$0xff]  ;;  %v2596_v33 = vld [vmem:[#allocation2 + $0x28] sm:$0xff]  ;;  %v145_v34 = vmul.f32 %v2592_v31, %v2526_v10  ;;  %v2610_v37 = vld [vmem:[#allocation2 + $0x30] sm:$0xff]  ;;  %v146_v38 = vmul.f32 %v2608_v36, %v2544_v16  ;;  %v129_v43 = vmul.f32 %v2592_v31, %v2592_v31  ;;  %v130_v48 = vmul.f32 %v2608_v36, %v2608_v36 }
  0x1b   :  { %v127_v35 = vmul.f32 %v2594_v32, %v2594_v32  ;;  %v2622_v40 = vld [vmem:[#allocation4 + $0x18] sm:$0xff]  ;;  %v2633_v44 = vld [vmem:[#allocation4 + $0x20] sm:$0xff]  ;;  %v2645_v49 = vld [vmem:[#allocation4 + $0x28] sm:$0xff]  ;;  %v117_v1 = vmul.f32 %v2596_v33, %v2596_v33  ;;  %v118_v7 = vmul.f32 %v2610_v37, %v2610_v37 }
  0x1c   :  { %v87_v41 = vld [vmem:[#allocation2 + $0x38] sm:$0xff]  ;;  %v147_v42 = vmul.f32 %v2622_v40, %v2562_v22  ;;  %v88_v46 = vld [vmem:[#allocation2 + $0x40] sm:$0xff]  ;;  %v148_v47 = vmul.f32 %v2633_v44, %v2580_v28  ;;  %v2649_v51 = vld [vmem:[#allocation2 + $0x48] sm:$0xff]  ;;  %v149_v52 = vmul.f32 %v2645_v49, %v2596_v33  ;;  %v131_v53 = vmul.f32 %v2622_v40, %v2622_v40 }
  0x1d   :  { %v2660_v54 = vld [vmem:[#allocation4 + $0x30] sm:$0xff]  ;;  %v132_v57 = vmul.f32 %v2633_v44, %v2633_v44  ;;  %v2673_v58 = vld [vmem:[#allocation4 + $0x38] sm:$0xff]  ;;  %v133_v61 = vmul.f32 %v2645_v49, %v2645_v49  ;;  %v152_v63 = vmul.f32 %v2510_v5, %v88_v46  ;;  %v153_v4 = vmul.f32 %v2528_v11, %v2649_v51 }
  0x1e   :  { %v150_v56 = vmul.f32 %v2660_v54, %v2610_v37  ;;  %v151_v60 = vmul.f32 %v2673_v58, %v87_v41  ;;  %v134_v0 = vmul.f32 %v2660_v54, %v2660_v54  ;;  %v135_v6 = vmul.f32 %v2673_v58, %v2673_v58 }
  0x1f   :  { %2031 = vmatmul.msk.f32.gmra.mxu0 %vm162_vm0, %v2526_v10  ;;  %2055 = vmatmul.msk.f32.gmra.mxu1 %vm162_vm0, %v2528_v11  ;;  %v154_v10 = vmul.f32 %v2546_v17, %v2504_v2 }
  0x20   :  { %2073 = vmatmul.msk.f32.gmra.mxu2 %vm162_vm0, %v123_v12  ;;  %2091 = vmatmul.msk.f32.gmra.mxu3 %vm162_vm0, %v141_v13  ;;  %v136_v12 = vmul.f32 %v2510_v5, %v2510_v5  ;;  %v119_v13 = vmul.f32 %v87_v41, %v87_v41 }
  0x27   :  { %2032 = vmatmul.msk.f32.gmra.mxu0 %vm162_vm0, %v2544_v16  ;;  %2056 = vmatmul.msk.f32.gmra.mxu1 %vm162_vm0, %v2546_v17  ;;  %v155_v16 = vmul.f32 %v2564_v23, %v2522_v8 }
  0x28   :  { %2092 = vmatmul.msk.f32.gmra.mxu3 %vm162_vm0, %v142_v18  ;;  %2074 = vmatmul.msk.f32.gmra.mxu2 %vm162_vm0, %v124_v19  ;;  %v137_v18 = vmul.f32 %v2528_v11, %v2528_v11 }
  0x2f   :  { %2033 = vmatmul.msk.f32.gmra.mxu0 %vm162_vm0, %v2562_v22  ;;  %2057 = vmatmul.msk.f32.gmra.mxu1 %vm162_vm0, %v2564_v23  ;;  %v156_v22 = vmul.f32 %v2506_v3, %v2542_v15 }
  0x30   :  { %2093 = vmatmul.msk.f32.gmra.mxu3 %vm162_vm0, %v143_v24  ;;  %2075 = vmatmul.msk.f32.gmra.mxu2 %vm162_vm0, %v125_v25 }
  0x37   :  { %2034 = vmatmul.msk.f32.gmra.mxu0 %vm162_vm0, %v2580_v28  ;;  %2058 = vmatmul.msk.f32.gmra.mxu1 %vm162_vm0, %v2506_v3  ;;  %v121_v3 = vmul.f32 %v2649_v51, %v2649_v51 }
  0x38   :  { %2094 = vmatmul.msk.f32.gmra.mxu3 %vm162_vm0, %v144_v29  ;;  %2076 = vmatmul.msk.f32.gmra.mxu2 %vm162_vm0, %v126_v30 }
  0x3f   :  { %2035 = vmatmul.msk.f32.gmra.mxu0 %vm162_vm0, %v2596_v33  ;;  %2059 = vmatmul.msk.f32.gmra.mxu1 %vm162_vm0, %v2524_v9 }
  0x40   :  { %2095 = vmatmul.msk.f32.gmra.mxu3 %vm162_vm0, %v145_v34  ;;  %2077 = vmatmul.msk.f32.gmra.mxu2 %vm162_vm0, %v127_v35 }
  0x47   :  { %2036 = vmatmul.msk.f32.gmra.mxu0 %vm162_vm0, %v2610_v37  ;;  %2060 = vmatmul.msk.f32.gmra.mxu1 %vm162_vm0, %v2540_v14 }
  0x48   :  { %2096 = vmatmul.msk.f32.gmra.mxu3 %vm162_vm0, %v146_v38  ;;  %2078 = vmatmul.msk.f32.gmra.mxu2 %vm162_vm0, %v128_v39  ;;  %v159_v39 = vmul.f32 %v2558_v20, %v2594_v32 }
  0x4f   :  { %2037 = vmatmul.msk.f32.gmra.mxu0 %vm162_vm0, %v87_v41  ;;  %2061 = vmatmul.msk.f32.gmra.mxu1 %vm162_vm0, %v2558_v20 }
  0x50   :  { %2097 = vmatmul.msk.f32.gmra.mxu3 %vm162_vm0, %v147_v42  ;;  %2079 = vmatmul.msk.f32.gmra.mxu2 %vm162_vm0, %v129_v43 }
  0x57   :  { %2038 = vmatmul.msk.f32.gmra.mxu0 %vm162_vm0, %v88_v46  ;;  %2062 = vmatmul.msk.f32.gmra.mxu1 %vm162_vm0, %v112_v45 }
  0x58   :  { %2098 = vmatmul.msk.f32.gmra.mxu3 %vm162_vm0, %v148_v47  ;;  %2080 = vmatmul.msk.f32.gmra.mxu2 %vm162_vm0, %v130_v48 }
  0x5f   :  { %2039 = vmatmul.msk.f32.gmra.mxu0 %vm162_vm0, %v2649_v51  ;;  %2063 = vmatmul.msk.f32.gmra.mxu1 %vm162_vm0, %v113_v50 }
  0x60   :  { %2099 = vmatmul.msk.f32.gmra.mxu3 %vm162_vm0, %v149_v52  ;;  %2081 = vmatmul.msk.f32.gmra.mxu2 %vm162_vm0, %v131_v53 }
  0x67   :  { %2040 = vmatmul.msk.f32.gmra.mxu0 %vm162_vm0, %v2504_v2  ;;  %2064 = vmatmul.msk.f32.gmra.mxu1 %vm162_vm0, %v114_v55  ;;  %v120_v2 = vmul.f32 %v88_v46, %v88_v46 }
  0x68   :  { %2100 = vmatmul.msk.f32.gmra.mxu3 %vm162_vm0, %v150_v56  ;;  %2082 = vmatmul.msk.f32.gmra.mxu2 %vm162_vm0, %v132_v57 }
  0x6f   :  { %2041 = vmatmul.msk.f32.gmra.mxu0 %vm162_vm0, %v2522_v8  ;;  %2065 = vmatmul.msk.f32.gmra.mxu1 %vm162_vm0, %v115_v59  ;;  %v138_v8 = vmul.f32 %v2546_v17, %v2546_v17 }
  0x70   :  { %2101 = vmatmul.msk.f32.gmra.mxu3 %vm162_vm0, %v151_v60  ;;  %2083 = vmatmul.msk.f32.gmra.mxu2 %vm162_vm0, %v133_v61 }
  0x77   :  { %2042 = vmatmul.msk.f32.gmra.mxu0 %vm162_vm0, %v2542_v15  ;;  %2066 = vmatmul.msk.f32.gmra.mxu1 %vm162_vm0, %v116_v62  ;;  %v157_v15 = vmul.f32 %v2524_v9, %v2560_v21 }
  0x78   :  { %2102 = vmatmul.msk.f32.gmra.mxu3 %vm162_vm0, %v152_v63  ;;  %2084 = vmatmul.msk.f32.gmra.mxu2 %vm162_vm0, %v134_v0 }
  0x7f   :  { %2043 = vmatmul.msk.f32.gmra.mxu0 %vm162_vm0, %v2560_v21  ;;  %2067 = vmatmul.msk.f32.gmra.mxu1 %vm162_vm0, %v117_v1 }
  0x80   :  { %2103 = vmatmul.msk.f32.gmra.mxu3 %vm162_vm0, %v153_v4  ;;  %2085 = vmatmul.msk.f32.gmra.mxu2 %vm162_vm0, %v135_v6 }
  0x87   :  { %2044 = vmatmul.msk.f32.gmra.mxu0 %vm162_vm0, %v2578_v27  ;;  %2068 = vmatmul.msk.f32.gmra.mxu1 %vm162_vm0, %v118_v7 }
  0x88   :  { %2104 = vmatmul.msk.f32.gmra.mxu3 %vm162_vm0, %v154_v10  ;;  %2086 = vmatmul.msk.f32.gmra.mxu2 %vm162_vm0, %v136_v12 }
  0x8f   :  { %2045 = vmatmul.msk.f32.gmra.mxu0 %vm162_vm0, %v2594_v32  ;;  %2069 = vmatmul.msk.f32.gmra.mxu1 %vm162_vm0, %v119_v13 }
  0x90   :  { %2105 = vmatmul.msk.f32.gmra.mxu3 %vm162_vm0, %v155_v16  ;;  %2087 = vmatmul.msk.f32.gmra.mxu2 %vm162_vm0, %v137_v18 }
  0x94   :  { %v2726_v5 = vpop.f32.mrf.mxu0  ;;  %v492_v19 = vpop.f32.mrf.mxu1 }
  0x97   :  { %2046 = vmatmul.msk.f32.gmra.mxu0 %vm162_vm0, %v2576_v26  ;;  %2070 = vmatmul.msk.f32.gmra.mxu1 %vm162_vm0, %v120_v2  ;;  %v139_v26 = vmul.f32 %v2564_v23, %v2564_v23  ;;  %v158_v23 = vmul.f32 %v2540_v14, %v2578_v27 }
  0x98   :  { %2106 = vmatmul.msk.f32.gmra.mxu3 %vm162_vm0, %v156_v22  ;;  %2088 = vmatmul.msk.f32.gmra.mxu2 %vm162_vm0, %v138_v8 }
  0x9b   :  { %v546_v11 = vpop.f32.mrf.mxu2  ;;  %v600_v24 = vpop.f32.mrf.mxu3 }
  0x9c   :  { %v2737_v25 = vpop.f32.mrf.mxu0  ;;  %v495_v28 = vpop.f32.mrf.mxu1 }
  0x9d   :  { %v2161_v17 = vpack.i.bf16 %v495_v28, %v492_v19 }
  0x9f   :  { %2162 = vrot.lane.b32.xlu2 %v2161_v17, %s2461_s2  ;;  %2047 = vmatmul.msk.f32.gmra.mxu0 %vm162_vm0, %v2592_v31 }
  0xa0   :  { %2071 = vmatmul.msk.f32.gmra.mxu1 %vm162_vm0, %v121_v3  ;;  %2107 = vmatmul.msk.f32.gmra.mxu3 %vm162_vm0, %v157_v15 }
  0xa1   :  { %2089 = vmatmul.msk.f32.gmra.mxu2 %vm162_vm0, %v139_v26 }
  0xa3   :  { %v549_v29 = vpop.f32.mrf.mxu2  ;;  %v603_v30 = vpop.f32.mrf.mxu3 }
  0xa4   :  { %v2166_v33 = vpack.i.bf16 %v549_v29, %v546_v11  ;;  %v2751_v9 = vpop.f32.mrf.mxu0  ;;  %v498_v21 = vpop.f32.mrf.mxu1  ;;  %v2171_v31 = vpack.i.bf16 %v603_v30, %v600_v24 }
  0xa6   :  { %2167 = vrot.lane.b32.xlu1 %v2166_v33, %s2462_s3 }
  0xa7   :  { %2048 = vmatmul.msk.f32.gmra.mxu0 %vm162_vm0, %v2608_v36 }
  0xa8   :  { %2108 = vmatmul.msk.f32.gmra.mxu3 %vm162_vm0, %v158_v23 }
  0xab   :  { %v606_v34 = vpop.f32.mrf.mxu3  ;;  %v552_v35 = vpop.f32.mrf.mxu2 }
  0xac   :  { %v2759_v37 = vpop.f32.mrf.mxu0  ;;  %v501_v38 = vpop.f32.mrf.mxu1 }
  0xad   :  { %v2176_v41 = vpack.i.bf16 %v501_v38, %v498_v21 }
  0xae   :  { %2172 = vrot.lane.b32.xlu1 %v2171_v31, %s2463_s9 }
  0xaf   :  { %2177 = vrot.lane.b32.xlu2 %v2176_v41, %s2461_s2  ;;  %2049 = vmatmul.msk.f32.gmra.mxu0 %vm162_vm0, %v2622_v40 }
  0xb0   :  { %2109 = vmatmul.msk.f32.gmra.mxu3 %vm162_vm0, %v159_v39 }
  0xb3   :  { %v609_v14 = vpop.f32.mrf.mxu3  ;;  %v555_v27 = vpop.f32.mrf.mxu2 }
  0xb4   :  { %v2768_v36 = vpop.f32.mrf.mxu0  ;;  %v504_v42 = vpop.f32.mrf.mxu1  ;;  %v2181_v43 = vpack.i.bf16 %v555_v27, %v552_v35  ;;  %v2186_v20 = vpack.i.bf16 %v609_v14, %v606_v34 }
  0xb7   :  { %2182 = vrot.lane.b32.xlu2 %v2181_v43, %s2462_s3  ;;  %2050 = vmatmul.msk.f32.gmra.mxu0 %vm162_vm0, %v2633_v44 }
  0xbb   :  { %v2773_v32 = vpop.f32.mrf.mxu3  ;;  %v558_v45 = vpop.f32.mrf.mxu2 }
  0xbc   :  { %v2775_v46 = vpop.f32.mrf.mxu0  ;;  %v507_v40 = vpop.f32.mrf.mxu1 }
  0xbd   :  { %v2191_v47 = vpack.i.bf16 %v507_v40, %v504_v42 }
  0xbf   :  { %2192 = vrot.lane.b32.xlu0 %v2191_v47, %s2461_s2  ;;  %2187 = vrot.lane.b32.xlu2 %v2186_v20, %s2463_s9 }
  0xc0   :  { %2051 = vmatmul.msk.f32.gmra.mxu0 %vm162_vm0, %v2645_v49 }
  0xc3   :  { %v2781_v48 = vpop.f32.mrf.mxu3  ;;  %v561_v50 = vpop.f32.mrf.mxu2 }
  0xc4   :  { %v2271_v44 = vpack.i.bf16 %v2781_v48, %v2773_v32  ;;  %v2785_v51 = vpop.f32.mrf.mxu0  ;;  %v510_v52 = vpop.f32.mrf.mxu1  ;;  %v2196_v53 = vpack.i.bf16 %v561_v50, %v558_v45 }
  0xc7   :  { %2197 = vrot.lane.b32.xlu0 %v2196_v53, %s2462_s3 }
  0xc8   :  { %2052 = vmatmul.msk.f32.gmra.mxu0 %vm162_vm0, %v2660_v54 }
  0xcb   :  { %v618_v55 = vpop.f32.mrf.mxu3  ;;  %v564_v56 = vpop.f32.mrf.mxu2 }
  0xcc   :  { %v2790_v57 = vpop.f32.mrf.mxu0  ;;  %v513_v49 = vpop.f32.mrf.mxu1 }
  0xcd   :  { %v2201_v59 = vpack.i.bf16 %v513_v49, %v510_v52 }
  0xcf   :  { %2202 = vrot.lane.b32.xlu1 %v2201_v59, %s2461_s2 }
  0xd0   :  { %2053 = vmatmul.msk.f32.gmra.mxu0 %vm162_vm0, %v2673_v58 }
  0xd3   :  { %v621_v60 = vpop.f32.mrf.mxu3  ;;  %v567_v61 = vpop.f32.mrf.mxu2 }
  0xd4   :  { %v2795_v62 = vpop.f32.mrf.mxu0  ;;  %v516_v63 = vpop.f32.mrf.mxu1  ;;  %v2206_v0 = vpack.i.bf16 %v567_v61, %v564_v56  ;;  %v2276_v42 = vpack.i.bf16 %v621_v60, %v618_v55 }
  0xd7   :  { %2207 = vrot.lane.b32.xlu1 %v2206_v0, %s2463_s9 }
  0xdb   :  { %v624_v54 = vpop.f32.mrf.mxu3  ;;  %v570_v1 = vpop.f32.mrf.mxu2 }
  0xdc   :  { %v2798_v4 = vpop.f32.mrf.mxu0  ;;  %v519_v6 = vpop.f32.mrf.mxu1 }
  0xdd   :  { %v2211_v7 = vpack.i.bf16 %v519_v6, %v516_v63 }
  0xdf   :  { %2212 = vrot.lane.b32.xlu2 %v2211_v7, %s2462_s3 }
  0xe3   :  { %v627_v10 = vpop.f32.mrf.mxu3  ;;  %v573_v12 = vpop.f32.mrf.mxu2 }
  0xe4   :  { %v2801_v13 = vpop.f32.mrf.mxu0  ;;  %v522_v58 = vpop.f32.mrf.mxu1  ;;  %v2216_v16 = vpack.i.bf16 %v573_v12, %v570_v1  ;;  %v2281_v49 = vpack.i.bf16 %v627_v10, %v624_v54 }
  0xe7   :  { %2217 = vrot.lane.b32.xlu2 %v2216_v16, %s2463_s9 }
  0xeb   :  { %v2804_v18 = vpop.f32.mrf.mxu3  ;;  %v576_v2 = vpop.f32.mrf.mxu2 }
  0xec   :  { %v2806_v19 = vpop.f32.mrf.mxu0  ;;  %v525_v22 = vpop.f32.mrf.mxu1 }
  0xed   :  { %v2221_v8 = vpack.i.bf16 %v525_v22, %v522_v58 }
  0xef   :  { %2222 = vrot.lane.b32.xlu0 %v2221_v8, %s2462_s3 }
  0xf3   :  { %v2809_v11 = vpop.f32.mrf.mxu3  ;;  %v579_v24 = vpop.f32.mrf.mxu2 }
  0xf4   :  { %v2286_v28 = vpack.i.bf16 %v2809_v11, %v2804_v18  ;;  %v2813_v3 = vpop.f32.mrf.mxu0  ;;  %v528_v15 = vpop.f32.mrf.mxu1  ;;  %v2226_v17 = vpack.i.bf16 %v579_v24, %v576_v2 }
  0xf7   :  { %2227 = vrot.lane.b32.xlu0 %v2226_v17, %s2463_s9 }
  0xf9   :  { %v2828_v59 = vpop.permute.xlu2 %2162 }
  0xfb   :  { %v636_v26 = vpop.f32.mrf.mxu3  ;;  %v582_v29 = vpop.f32.mrf.mxu2 }
  0xfc   :  { %v2816_v30 = vpop.f32.mrf.mxu0  ;;  %v531_v33 = vpop.f32.mrf.mxu1 }
  0xfd   :  { %v2231_v21 = vpack.i.bf16 %v531_v33, %v528_v15 }
  0xff   :  { %2232 = vrot.lane.b32.xlu1 %v2231_v21, %s2462_s3 }
 0x103   :  { %v639_v23 = vpop.f32.mrf.mxu3  ;;  %v585_v31 = vpop.f32.mrf.mxu2 }
 0x104   :  { %v2819_v34 = vpop.f32.mrf.mxu0  ;;  %v534_v35 = vpop.f32.mrf.mxu1  ;;  %v2236_v38 = vpack.i.bf16 %v585_v31, %v582_v29  ;;  %v2291_v50 = vpack.i.bf16 %v639_v23, %v636_v26 }
 0x107   :  { %2237 = vrot.lane.b32.xlu1 %v2236_v38, %s2463_s9 }
 0x109   :  { %v2832_v7 = vpop.permute.xlu2 %2177 }
 0x10b   :  { %v642_v39 = vpop.f32.mrf.mxu3  ;;  %v588_v41 = vpop.f32.mrf.mxu2 }
 0x10c   :  { %v2822_v14 = vpop.f32.mrf.mxu0  ;;  %v537_v27 = vpop.f32.mrf.mxu1 }
 0x10d   :  { %v2241_v43 = vpack.i.bf16 %v537_v27, %v534_v35 }
 0x10f   :  { %2277 = vrot.lane.b32.xlu1 %v2276_v42, %s2464_s10  ;;  %2242 = vrot.lane.b32.xlu2 %v2241_v43, %s2462_s3 }
 0x111   :  { %v2183_v2 = vpop.permute.xlu2 %2182 }
 0x112   :  { %v2185_v17 = vunpack.i.h.bf16 %v2183_v2  ;;  %v2184_v26 = vunpack.i.l.bf16 %v2183_v2 }
 0x113   :  { %v645_v20 = vpop.f32.mrf.mxu3  ;;  %v591_v45 = vpop.f32.mrf.mxu2 }
 0x114   :  { %v468_v40 = vpop.f32.mrf.mxu0  ;;  %v2246_v47 = vpack.i.bf16 %v591_v45, %v588_v41  ;;  %v540_v52 = vpop.f32.mrf.mxu1  ;;  %v2296_v1 = vpack.i.bf16 %v645_v20, %v642_v39 }
 0x117   :  { %2292 = vrot.lane.b32.xlu1 %v2291_v50, %s2464_s10  ;;  %2247 = vrot.lane.b32.xlu2 %v2246_v47, %s2463_s9 }
 0x118   :  { %v2836_v54 = vpop.permute.xlu1 %2167 }
 0x119   :  { %v2188_v32 = vpop.permute.xlu2 %2187 }
 0x11b   :  { %v648_v53 = vpop.f32.mrf.mxu3  ;;  %v594_v60 = vpop.f32.mrf.mxu2 }
 0x11c   :  { %v471_v56 = vpop.f32.mrf.mxu0 }
 0x11d   :  { %v2251_v55 = vpack.i.bf16 %v471_v56, %v468_v40  ;;  %v543_v61 = vpop.f32.mrf.mxu1 }
 0x11e   :  { %v2256_v6 = vpack.i.bf16 %v543_v61, %v540_v52 }
 0x11f   :  { %2252 = vrot.lane.b32.xlu0 %v2251_v55, %s2461_s2  ;;  %2282 = vrot.lane.b32.xlu2 %v2281_v49, %s2464_s10 }
 0x120   :  { %v2173_v22 = vpop.permute.xlu1 %2172 }
 0x121   :  { %v2175_v29 = vunpack.i.h.bf16 %v2173_v22  ;;  %v2174_v21 = vunpack.i.l.bf16 %v2173_v22 }
 0x123   :  { %v651_v63 = vpop.f32.mrf.mxu3 }
 0x124   :  { %v474_v0 = vpop.f32.mrf.mxu0  ;;  %v597_v10 = vpop.f32.mrf.mxu2  ;;  %v2301_v45 = vpack.i.bf16 %v651_v63, %v648_v53 }
 0x125   :  { %v2261_v16 = vpack.i.bf16 %v597_v10, %v594_v60 }
 0x127   :  { %2297 = vrot.lane.b32.xlu2 %v2296_v1, %s2464_s10  ;;  %2257 = vrot.lane.b32.xlu0 %v2256_v6, %s2462_s3  ;;  %v2164_v1 = vunpack.i.l.bf16 %v2828_v59  ;;  %v2165_v6 = vunpack.i.h.bf16 %v2828_v59 }
 0x129   :  { %v925_v59 = vsel %vm162_vm0, %v2798_v4, %v2165_v6 }
 0x12b   :  { %v654_v12 = vpop.f32.mrf.mxu3 }
 0x12c   :  { %v477_v58 = vpop.f32.mrf.mxu0 }
 0x12d   :  { %v2266_v39 = vpack.i.bf16 %v477_v58, %v474_v0 }
 0x12f   :  { %2262 = vrot.lane.b32.xlu0 %v2261_v16, %s2463_s9 }
 0x131   :  { %v2193_v8 = vpop.permute.xlu0 %2192 }
 0x132   :  { %v2195_v24 = vunpack.i.h.bf16 %v2193_v8  ;;  %v2194_v15 = vunpack.i.l.bf16 %v2193_v8 }
 0x133   :  { %v657_v33 = vpop.f32.mrf.mxu3 }
 0x134   :  { %v928_v23 = vsel %vm162_vm0, %v2813_v3, %v2194_v15  ;;  %v929_v31 = vsel %vm162_vm0, %v2816_v30, %v2195_v24  ;;  %v2306_v35 = vpack.i.bf16 %v657_v33, %v654_v12  ;;  %v480_v38 = vpop.f32.mrf.mxu0  ;;  %v2180_v12 = vunpack.i.h.bf16 %v2832_v7 }
 0x135   :  { %v946_v41 = vsel %vm932_vm1, %v929_v31, %v2185_v17  ;;  %v945_v27 = vsel %vm932_vm1, %v928_v23, %v2184_v26  ;;  %v924_v15 = vsel %vm162_vm0, %v2795_v62, %v2164_v1  ;;  %v2179_v17 = vunpack.i.l.bf16 %v2832_v7 }
 0x136   :  { %2307 = vrot.lane.b32.xlu1 %v2306_v35, %s2464_s10  ;;  %v2847_v42 = vsel %vm949_vm2, %v946_v41, %v2175_v29  ;;  %v2850_v43 = vsel %vm949_vm2, %v945_v27, %v2174_v21  ;;  %v2170_v29 = vunpack.i.h.bf16 %v2836_v54  ;;  %v2190_v33 = vunpack.i.h.bf16 %v2188_v32 }
 0x137   :  { %2267 = vrot.lane.b32.xlu0 %v2266_v39, %s2461_s2  ;;  %v2189_v21 = vunpack.i.l.bf16 %v2188_v32  ;;  %v2169_v23 = vunpack.i.l.bf16 %v2836_v54 }
 0x139   :  { %v2198_v52 = vpop.permute.xlu0 %2197  ;;  %v2870_v49 = vpop.permute.xlu2 %2212 }
 0x13a   :  { %v2200_v8 = vunpack.i.h.bf16 %v2198_v52  ;;  %v2199_v24 = vunpack.i.l.bf16 %v2198_v52  ;;  %v2215_v62 = vunpack.i.h.bf16 %v2870_v49  ;;  %v2214_v4 = vunpack.i.l.bf16 %v2870_v49 }
 0x13d   :  { %v483_v3 = vpop.f32.mrf.mxu0 }
 0x13e   :  { %v2311_v20 = vpack.i.bf16 %v483_v3, %v480_v38 }
 0x13f   :  { %2272 = vrot.lane.b32.xlu0 %v2271_v44, %s2464_s10 }
 0x140   :  { %2312 = vrot.lane.b32.xlu1 %v2311_v20, %s2461_s2 }
 0x141   :  { %v2203_v50 = vpop.permute.xlu1 %2202 }
 0x142   :  { %v2205_v63 = vunpack.i.h.bf16 %v2203_v50  ;;  %v2204_v0 = vunpack.i.l.bf16 %v2203_v50 }
 0x144   :  { %v930_v58 = vsel %vm162_vm0, %v2819_v34, %v2204_v0  ;;  %v931_v16 = vsel %vm162_vm0, %v2822_v14, %v2205_v63  ;;  %v2900_v14 = vsel %vm162_vm0, %v2806_v19, %v2180_v12 }
 0x145   :  { %v486_v30 = vpop.f32.mrf.mxu0  ;;  %v948_v26 = vsel %vm932_vm1, %v931_v16, %v2200_v8  ;;  %v947_v34 = vsel %vm932_vm1, %v930_v58, %v2199_v24 }
 0x146   :  { %v2907_v39 = vsel %vm949_vm2, %v948_v26, %v2190_v33  ;;  %v2910_v41 = vsel %vm949_vm2, %v947_v34, %v2189_v21 }
 0x147   :  { %2287 = vrot.lane.b32.xlu0 %v2286_v28, %s2464_s10  ;;  %v2218_v28 = vpop.permute.xlu2 %2217 }
 0x148   :  { %v2220_v31 = vunpack.i.h.bf16 %v2218_v28  ;;  %v2219_v35 = vunpack.i.l.bf16 %v2218_v28 }
 0x149   :  { %v2864_v56 = vpop.permute.xlu1 %2207 }
 0x14a   :  { %v2210_v19 = vunpack.i.h.bf16 %v2864_v56  ;;  %v2209_v27 = vunpack.i.l.bf16 %v2864_v56 }
 0x14d   :  { %v489_v40 = vpop.f32.mrf.mxu0 }
 0x14e   :  { %v2316_v47 = vpack.i.bf16 %v489_v40, %v486_v30 }
 0x14f   :  { %2302 = vrot.lane.b32.xlu0 %v2301_v45, %s2464_s10 }
 0x150   :  { %2317 = vrot.lane.b32.xlu1 %v2316_v47, %s2461_s2 }
 0x161   :  { %v2866_v48 = vpop.permute.xlu0 %2222 }
 0x162   :  { %v2225_v3 = vunpack.i.h.bf16 %v2866_v48  ;;  %v2224_v32 = vunpack.i.l.bf16 %v2866_v48 }
 0x169   :  { %v2872_v18 = vpop.permute.xlu0 %2227  ;;  %v2876_v55 = vpop.permute.xlu2 %2242 }
 0x16a   :  { %v2230_v49 = vunpack.i.h.bf16 %v2872_v18  ;;  %v2229_v28 = vunpack.i.l.bf16 %v2872_v18 }
 0x171   :  { %v2868_v44 = vpop.permute.xlu1 %2232  ;;  %v2248_v2 = vpop.permute.xlu2 %2247 }
 0x172   :  { %v2250_v63 = vunpack.i.h.bf16 %v2248_v2  ;;  %v2234_v26 = vunpack.i.l.bf16 %v2868_v44 }
 0x179   :  { %v2874_v11 = vpop.permute.xlu1 %2237  ;;  %v2920_v0 = vpop.permute.xlu2 %2282 }
 0x181   :  { %v2878_v60 = vpop.permute.xlu1 %2277 }
 0x182   :  { %v2279_v8 = vunpack.i.l.bf16 %v2878_v60 }
 0x189   :  { %v2889_v22 = vpop.permute.xlu1 %2292 }
 0x18a   :  { %v2295_v34 = vunpack.i.h.bf16 %v2889_v22 }
 0x191   :  { %v2253_v53 = vpop.permute.xlu0 %2252 }
 0x192   :  { %v2255_v20 = vunpack.i.h.bf16 %v2253_v53  ;;  %v2254_v45 = vunpack.i.l.bf16 %v2253_v53 }
 0x194   :  { %v917_v48 = vsel %vm162_vm0, %v2737_v25, %v2255_v20  ;;  %v916_v12 = vsel %vm162_vm0, %v2726_v5, %v2254_v45 }
 0x195   :  { %v934_v5 = vsel %vm932_vm1, %v917_v48, %v2215_v62 }
 0x199   :  { %v2258_v61 = vpop.permute.xlu0 %2257 }
 0x19a   :  { %v2260_v38 = vunpack.i.h.bf16 %v2258_v61  ;;  %v2259_v40 = vunpack.i.l.bf16 %v2258_v61  ;;  %v2280_v61 = vunpack.i.h.bf16 %v2878_v60 }
 0x19c   :  { %v942_v56 = vsel %vm932_vm1, %v925_v59, %v2260_v38  ;;  %v941_v16 = vsel %vm932_vm1, %v924_v15, %v2259_v40  ;;  %v2235_v59 = vunpack.i.h.bf16 %v2868_v44  ;;  %v2947_v15 = vld [vmem:[#allocation7] sm:$0xff]  ;;  %v951_v40 = vsel %vm949_vm2, %v934_v5, %v2210_v19 }
 0x19d   :  { %v959_v25 = vsel %vm949_vm2, %v942_v56, %v2250_v63  ;;  %v2298_v56 = vpop.permute.xlu2 %2297 }
 0x19e   :  { %v976_v20 = vsel %vm966_vm3, %v959_v25, %v2295_v34 }
 0x1a1   :  { %v2882_v10 = vpop.permute.xlu0 %2262 }
 0x1a8   :  { %v2915_v47 = vpop.permute.xlu1 %2307 }
 0x1a9   :  { %v2268_v30 = vpop.permute.xlu0 %2267  ;;  %v2310_v33 = vunpack.i.h.bf16 %v2915_v47  ;;  %v2309_v62 = vunpack.i.l.bf16 %v2915_v47 }
 0x1aa   :  { %v2270_v50 = vunpack.i.h.bf16 %v2268_v30  ;;  %v2269_v52 = vunpack.i.l.bf16 %v2268_v30 }
 0x1ab   :  { %v982_v19 = vsel %vm966_vm3, %v2907_v39, %v2310_v33  ;;  %v926_v39 = vsel %vm162_vm0, %v2801_v13, %v2179_v17  ;;  %v2299_v17 = vunpack.i.l.bf16 %v2298_v56 }
 0x1ac   :  { %v919_v1 = vsel %vm162_vm0, %v2759_v37, %v2270_v50  ;;  %v918_v53 = vsel %vm162_vm0, %v2751_v9, %v2269_v52  ;;  %v2249_v9 = vunpack.i.l.bf16 %v2248_v2  ;;  %v2265_v50 = vunpack.i.h.bf16 %v2882_v10 }
 0x1ad   :  { %v936_v6 = vsel %vm932_vm1, %v919_v1, %v2225_v3  ;;  %v935_v18 = vsel %vm932_vm1, %v918_v53, %v2224_v32  ;;  %v2285_v32 = vunpack.i.h.bf16 %v2920_v0  ;;  %v2264_v1 = vunpack.i.l.bf16 %v2882_v10 }
 0x1ae   :  { %v953_v58 = vsel %vm949_vm2, %v936_v6, %v2220_v31  ;;  %v952_v37 = vsel %vm949_vm2, %v935_v18, %v2219_v35  ;;  %v958_v60 = vsel %vm949_vm2, %v941_v16, %v2249_v9  ;;  %v933_v31 = vsel %vm932_vm1, %v916_v12, %v2214_v4  ;;  %v984_v18 = vld [vmem:[#allocation7 + $0x8] sm:$0xff] }
 0x1af   :  { %v970_v24 = vsel %vm966_vm3, %v953_v58, %v2280_v61  ;;  %v969_v2 = vsel %vm966_vm3, %v952_v37, %v2279_v8  ;;  %v2294_v35 = vunpack.i.l.bf16 %v2889_v22  ;;  %v950_v22 = vsel %vm949_vm2, %v933_v31, %v2209_v27 }
 0x1b0   :  { %1133 = vmatpush.msrb.mxu2 %v970_v24  ;;  %v944_v10 = vsel %vm932_vm1, %v2900_v14, %v2170_v29  ;;  %v2284_v6 = vunpack.i.l.bf16 %v2920_v0  ;;  %v943_v14 = vsel %vm932_vm1, %v926_v39, %v2169_v23  ;;  %v2245_v37 = vunpack.i.h.bf16 %v2876_v55 }
 0x1b1   :  { %v2273_v21 = vpop.permute.xlu0 %2272  ;;  %v975_v4 = vsel %vm966_vm3, %v958_v60, %v2294_v35  ;;  %v960_v13 = vsel %vm949_vm2, %v943_v14, %v2264_v1  ;;  %v2244_v16 = vunpack.i.l.bf16 %v2876_v55  ;;  %v2240_v8 = vunpack.i.h.bf16 %v2874_v11 }
 0x1b2   :  { %v2313_v38 = vpop.permute.xlu1 %2312  ;;  %v2275_v44 = vunpack.i.h.bf16 %v2273_v21  ;;  %v2274_v3 = vunpack.i.l.bf16 %v2273_v21  ;;  %1134 = vmatpush.msrb.mxu2 %v969_v2  ;;  %v977_v12 = vsel %vm966_vm3, %v960_v13, %v2299_v17  ;;  %v2239_v24 = vunpack.i.l.bf16 %v2874_v11 }
 0x1b3   :  { %v2315_v30 = vunpack.i.h.bf16 %v2313_v38  ;;  %v2314_v45 = vunpack.i.l.bf16 %v2313_v38  ;;  %2112 = vmatmul.msk.f32.vlgmr.msrb.gmra.mxu2 %vm162_vm0, %v2947_v15 }
 0x1b4   :  { %1517 = vmatpush.msra.mxu2 %v976_v20  ;;  %v968_v52 = vsel %vm966_vm3, %v951_v40, %v2275_v44  ;;  %v967_v53 = vsel %vm966_vm3, %v950_v22, %v2274_v3 }
 0x1b5   :  { %v921_v47 = vsel %vm162_vm0, %v2775_v46, %v2315_v30  ;;  %v920_v63 = vsel %vm162_vm0, %v2768_v36, %v2314_v45  ;;  %1005 = vmatpush.msrb.mxu1 %v968_v52  ;;  %v981_v36 = vsel %vm966_vm3, %v2910_v41, %v2309_v62  ;;  %v961_v41 = vsel %vm949_vm2, %v944_v10, %v2265_v50 }
 0x1b6   :  { %1518 = vmatpush.msra.mxu2 %v975_v4  ;;  %v938_v27 = vsel %vm932_vm1, %v921_v47, %v2235_v59  ;;  %v937_v61 = vsel %vm932_vm1, %v920_v63, %v2234_v26 }
 0x1b7   :  { %1006 = vmatpush.msrb.mxu1 %v967_v53  ;;  %v955_v46 = vsel %vm949_vm2, %v938_v27, %v2230_v49  ;;  %v954_v48 = vsel %vm949_vm2, %v937_v61, %v2229_v28  ;;  %v2300_v28 = vunpack.i.h.bf16 %v2298_v56 }
 0x1b8   :  { %1901 = vmatpush.msrb.mxu2 %v982_v19  ;;  %2110 = vmatmul.msk.f32.vlgmr.msrb.gmra.mxu1 %vm162_vm0, %v2947_v15  ;;  %v972_v49 = vsel %vm966_vm3, %v955_v46, %v2285_v32  ;;  %v971_v29 = vsel %vm966_vm3, %v954_v48, %v2284_v6 }
 0x1b9   :  { %1261 = vmatpush.msrb.mxu3 %v972_v49  ;;  %v2288_v7 = vpop.permute.xlu0 %2287  ;;  %v978_v0 = vsel %vm966_vm3, %v961_v41, %v2300_v28 }
 0x1ba   :  { %1902 = vmatpush.msrb.mxu2 %v981_v36  ;;  %v2290_v26 = vunpack.i.h.bf16 %v2288_v7  ;;  %v2289_v2 = vunpack.i.l.bf16 %v2288_v7 }
 0x1bb   :  { %1262 = vmatpush.msrb.mxu3 %v971_v29  ;;  %2113 = vmatmul.msk.f32.gmra.mxu2 %vm162_vm0, %v984_v18 }
 0x1bc   :  { %2114 = vmatmul.msk.f32.vlgmr.msrb.gmra.mxu3 %vm162_vm0, %v2947_v15 }
 0x1bd   :  { %1645 = vmatpush.msra.mxu3 %v978_v0 }
 0x1bf   :  { %1646 = vmatpush.msra.mxu3 %v977_v12 }
 0x1c0   :  { %2111 = vmatmul.msk.f32.gmra.mxu1 %vm162_vm0, %v984_v18 }
 0x1c1   :  { %v2303_v9 = vpop.permute.xlu0 %2302 }
 0x1c2   :  { %v2318_v54 = vpop.permute.xlu1 %2317  ;;  %v2305_v5 = vunpack.i.h.bf16 %v2303_v9  ;;  %v2304_v60 = vunpack.i.l.bf16 %v2303_v9 }
 0x1c3   :  { %v2320_v23 = vunpack.i.h.bf16 %v2318_v54  ;;  %v2319_v58 = vunpack.i.l.bf16 %v2318_v54  ;;  %2118 = vmatmul.msk.f32.vlgmr.msra.gmra.mxu2 %vm162_vm0, %v2947_v15 }
 0x1c4   :  { %2115 = vmatmul.msk.f32.gmra.mxu3 %vm162_vm0, %v984_v18  ;;  %v979_v31 = vsel %vm966_vm3, %v2850_v43, %v2304_v60 }
 0x1c5   :  { %v923_v25 = vsel %vm162_vm0, %v2790_v57, %v2320_v23  ;;  %v922_v59 = vsel %vm162_vm0, %v2785_v51, %v2319_v58  ;;  %v980_v51 = vsel %vm966_vm3, %v2847_v42, %v2305_v5 }
 0x1c6   :  { %v940_v34 = vsel %vm932_vm1, %v923_v25, %v2245_v37  ;;  %v939_v55 = vsel %vm932_vm1, %v922_v59, %v2244_v16 }
 0x1c7   :  { %v957_v33 = vsel %vm949_vm2, %v940_v34, %v2240_v8  ;;  %v956_v21 = vsel %vm949_vm2, %v939_v55, %v2239_v24 }
 0x1c8   :  { %v974_v11 = vsel %vm966_vm3, %v957_v33, %v2290_v26  ;;  %v973_v57 = vsel %vm966_vm3, %v956_v21, %v2289_v2 }
 0x1c9   :  { %1389 = vmatpush.msra.mxu1 %v974_v11 }
 0x1cb   :  { %1390 = vmatpush.msra.mxu1 %v973_v57  ;;  %2119 = vmatmul.msk.f32.gmra.mxu2 %vm162_vm0, %v984_v18 }
 0x1cc   :  { %2116 = vmatmul.msk.f32.vlgmr.msra.gmra.mxu1 %vm162_vm0, %v2947_v15  ;;  %2120 = vmatmul.msk.f32.vlgmr.msra.gmra.mxu3 %vm162_vm0, %v2947_v15 }
 0x1cd   :  { %1773 = vmatpush.msrb.mxu1 %v980_v51 }
 0x1cf   :  { %1774 = vmatpush.msrb.mxu1 %v979_v31 }
 0x1d3   :  { %2124 = vmatmul.msk.f32.vlgmr.msrb.gmra.mxu2 %vm162_vm0, %v2947_v15 }
 0x1d4   :  { %2117 = vmatmul.msk.f32.gmra.mxu1 %vm162_vm0, %v984_v18  ;;  %2121 = vmatmul.msk.f32.gmra.mxu3 %vm162_vm0, %v984_v18 }
 0x1db   :  { %2125 = vmatmul.msk.f32.gmra.mxu2 %vm162_vm0, %v984_v18 }
 0x1dc   :  { %2122 = vmatmul.msk.f32.vlgmr.msrb.gmra.mxu1 %vm162_vm0, %v2947_v15 }
 0x1e4   :  { %2123 = vmatmul.msk.f32.gmra.mxu1 %vm162_vm0, %v984_v18 }
 0x235   :  { %v3033_v42 = vpop.f32.mrf.mxu1 }
 0x236   :  { %1018 = vrot.lane.b32.xlu2 %v3033_v42, %s2465_s11  ;;  %v3039_v43 = vmul.f32 %v3033_v42, %v3033_v42  ;;  %v3043_v35 = vpop.f32.mrf.mxu2 }
 0x237   :  { %v3089_v40 = vmul.f32 %v3043_v35, %v3043_v35 }
 0x238   :  { %1028 = vrot.lane.b32.xlu1 %v3039_v43, %s2462_s3 }
 0x23d   :  { %v3045_v38 = vpop.f32.mrf.mxu1 }
 0x23e   :  { %1020 = vrot.lane.b32.xlu0 %v3045_v38, %s2465_s11  ;;  %v3051_v15 = vmul.f32 %v3045_v38, %v3045_v38  ;;  %v3059_v3 = vpop.f32.mrf.mxu2 }
 0x23f   :  { %v3057_v44 = vpop.f32.mrf.mxu3  ;;  %v3073_v62 = vmul.f32 %v3059_v3, %v3059_v3 }
 0x240   :  { %1064 = vrot.lane.b32.xlu1 %v3039_v43, %s2465_s11  ;;  %1030 = vrot.lane.b32.xlu2 %v3051_v15, %s2462_s3  ;;  %v3063_v20 = vmul.f32 %v3057_v44, %v3057_v44 }
 0x246   :  { %1148 = vrot.lane.b32.xlu0 %v3059_v3, %s2465_s11  ;;  %v3077_v30 = vpop.f32.mrf.mxu2 }
 0x247   :  { %v3109_v4 = vmul.f32 %v3077_v30, %v3077_v30  ;;  %v3121_v32 = vpop.f32.mrf.mxu3 }
 0x248   :  { %1284 = vrot.lane.b32.xlu1 %v3063_v20, %s2462_s3  ;;  %1066 = vrot.lane.b32.xlu2 %v3051_v15, %s2465_s11  ;;  %v3149_v1 = vmul.f32 %v3121_v32, %v3121_v32 }
 0x249   :  { %v3083_v45 = vpop.f32.mrf.mxu1 }
 0x24a   :  { %v3115_v22 = vmul.f32 %v3083_v45, %v3083_v45  ;;  %3599 = vst [vmem:[#allocation14_spill] sm:$0xff] %v3149_v1 }
 0x24e   :  { %1158 = vrot.lane.b32.xlu0 %v3073_v62, %s2462_s3  ;;  %v3095_v50 = vpop.f32.mrf.mxu2 }
 0x24f   :  { %v3099_v52 = vmul.f32 %v3095_v50, %v3095_v50  ;;  %v3131_v63 = vpop.f32.mrf.mxu3 }
 0x250   :  { %1320 = vrot.lane.b32.xlu1 %v3063_v20, %s2465_s11  ;;  %1146 = vrot.lane.b32.xlu2 %v3043_v35, %s2465_s11  ;;  %v3143_v56 = vmul.f32 %v3131_v63, %v3131_v63 }
 0x251   :  { %3597 = vst [vmem:[#allocation12_spill] sm:$0xff] %v3099_v52  ;;  %v3139_v19 = vpop.f32.mrf.mxu1 }
 0x252   :  { %3598 = vst [vmem:[#allocation13_spill] sm:$0xff] %v3143_v56  ;;  %v3169_v61 = vmul.f32 %v3139_v19, %v3139_v19 }
 0x254   :  { %3601 = vst [vmem:[#allocation16_spill] sm:$0xff] %v3169_v61 }
 0x256   :  { %1194 = vrot.lane.b32.xlu0 %v3073_v62, %s2465_s11  ;;  %v3129_v47 = vpop.f32.mrf.mxu2 }
 0x257   :  { %v3187_v10 = vmul.f32 %v3129_v47, %v3129_v47  ;;  %v3193_v6 = vpop.f32.mrf.mxu3 }
 0x258   :  { %1402 = vrot.lane.b32.xlu1 %v3083_v45, %s2465_s11  ;;  %1156 = vrot.lane.b32.xlu2 %v3089_v40, %s2462_s3  ;;  %v3207_v28 = vmul.f32 %v3193_v6, %v3193_v6 }
 0x259   :  { %v3177_v46 = vpop.f32.mrf.mxu1  ;;  %3603 = vst [vmem:[#allocation18_spill] sm:$0xff] %v3187_v10 }
 0x25a   :  { %v3181_v48 = vmul.f32 %v3177_v46, %v3177_v46  ;;  %3604 = vst [vmem:[#allocation19_spill] sm:$0xff] %v3207_v28 }
 0x25c   :  { %3602 = vst [vmem:[#allocation17_spill] sm:$0xff] %v3181_v48 }
 0x25e   :  { %1530 = vrot.lane.b32.xlu0 %v3077_v30, %s2465_s11  ;;  %v3155_v53 = vpop.f32.mrf.mxu2 }
 0x25f   :  { %v3159_v27 = vmul.f32 %v3155_v53, %v3155_v53 }
 0x260   :  { %1192 = vrot.lane.b32.xlu2 %v3089_v40, %s2465_s11  ;;  %1542 = vrot.lane.b32.xlu1 %v3099_v52, %s2462_s3 }
 0x261   :  { %3600 = vst [vmem:[#allocation15_spill] sm:$0xff] %v3159_v27  ;;  %v3195_v49 = vpop.f32.mrf.mxu1 }
 0x262   :  { %v3211_v14 = vmul.f32 %v3195_v49, %v3195_v49 }
 0x264   :  { %3605 = vst [vmem:[#allocation20_spill] sm:$0xff] %v3211_v14 }
 0x266   :  { %1540 = vrot.lane.b32.xlu0 %v3109_v4, %s2462_s3 }
 0x268   :  { %1274 = vrot.lane.b32.xlu2 %v3057_v44, %s2465_s11  ;;  %1412 = vrot.lane.b32.xlu1 %v3115_v22, %s2462_s3 }
 0x26e   :  { %1576 = vrot.lane.b32.xlu0 %v3109_v4, %s2465_s11 }
 0x270   :  { %1276 = vrot.lane.b32.xlu2 %v3121_v32, %s2465_s11  ;;  %1448 = vrot.lane.b32.xlu1 %v3115_v22, %s2465_s11 }
 0x276   :  { %1914 = vrot.lane.b32.xlu0 %v3129_v47, %s2465_s11 }
 0x278   :  { %1532 = vrot.lane.b32.xlu2 %v3095_v50, %s2465_s11  ;;  %1658 = vrot.lane.b32.xlu1 %v3131_v63, %s2465_s11 }
 0x27e   :  { %1404 = vrot.lane.b32.xlu0 %v3139_v19, %s2465_s11 }
 0x280   :  { %1286 = vrot.lane.b32.xlu2 %v3149_v1, %s2462_s3  ;;  %1704 = vrot.lane.b32.xlu1 %v3143_v56, %s2465_s11 }
 0x286   :  { %1668 = vrot.lane.b32.xlu0 %v3143_v56, %s2462_s3 }
 0x288   :  { %1322 = vrot.lane.b32.xlu2 %v3149_v1, %s2465_s11  ;;  %1926 = vrot.lane.b32.xlu1 %v3159_v27, %s2462_s3 }
 0x28e   :  { %1414 = vrot.lane.b32.xlu0 %v3169_v61, %s2462_s3 }
 0x290   :  { %1578 = vrot.lane.b32.xlu2 %v3099_v52, %s2465_s11  ;;  %1962 = vrot.lane.b32.xlu1 %v3159_v27, %s2465_s11  ;;  %v1019_v36 = vpop.permute.xlu2 %1018 }
 0x291   :  { %v3231_v12 = vmul.f32 %v1019_v36, %v3033_v42 }
 0x296   :  { %1450 = vrot.lane.b32.xlu0 %v3169_v61, %s2465_s11 }
 0x298   :  { %1924 = vrot.lane.b32.xlu2 %v3187_v10, %s2462_s3  ;;  %1796 = vrot.lane.b32.xlu1 %v3181_v48, %s2462_s3 }
 0x29a   :  { %v1031_v39 = vpop.permute.xlu2 %1030 }
 0x29b   :  { %v3238_v23 = vsub.f32 %v3045_v38, %v1031_v39 }
 0x29e   :  { %1660 = vrot.lane.b32.xlu0 %v3193_v6, %s2465_s11 }
 0x2a0   :  { %1960 = vrot.lane.b32.xlu2 %v3187_v10, %s2465_s11  ;;  %1788 = vrot.lane.b32.xlu1 %v3195_v49, %s2465_s11 }
 0x2a2   :  { %v3203_v41 = vpop.permute.xlu2 %1066 }
 0x2a6   :  { %1706 = vrot.lane.b32.xlu0 %v3207_v28, %s2465_s11 }
 0x2a8   :  { %1916 = vrot.lane.b32.xlu2 %v3155_v53, %s2465_s11  ;;  %1834 = vrot.lane.b32.xlu1 %v3211_v14, %s2465_s11 }
 0x2aa   :  { %v1029_v7 = vpop.permute.xlu1 %1028  ;;  %v1147_v29 = vpop.permute.xlu2 %1146 }
 0x2ab   :  { %v3245_v16 = vsub.f32 %v3033_v42, %v1029_v7  ;;  %v3262_v26 = vmul.f32 %v1147_v29, %v3043_v35 }
 0x2ae   :  { %1798 = vrot.lane.b32.xlu0 %v3211_v14, %s2462_s3 }
 0x2b0   :  { %v1021_v13 = vpop.permute.xlu0 %1020  ;;  %1670 = vrot.lane.b32.xlu2 %v3207_v28, %s2462_s3 }
 0x2b1   :  { %v3224_v17 = vmul.f32 %v1021_v13, %v3045_v38 }
 0x2b2   :  { %v3226_v0 = vpop.permute.xlu1 %1064  ;;  %v1157_v18 = vpop.permute.xlu2 %1156 }
 0x2b3   :  { %1040 = vrot.lane.b32.xlu1 %v3224_v17, %s2464_s10  ;;  %v3279_v2 = vsub.f32 %v3043_v35, %v1157_v18 }
 0x2b6   :  { %1038 = vrot.lane.b32.xlu0 %v3231_v12, %s2464_s10 }
 0x2b8   :  { %v1149_v54 = vpop.permute.xlu0 %1148  ;;  %1786 = vrot.lane.b32.xlu2 %v3177_v46, %s2465_s11 }
 0x2b9   :  { %v3259_v59 = vmul.f32 %v1149_v54, %v3059_v3 }
 0x2ba   :  { %v1285_v58 = vpop.permute.xlu1 %1284  ;;  %v3240_v37 = vpop.permute.xlu2 %1192 }
 0x2bb   :  { %1078 = vrot.lane.b32.xlu1 %v3238_v23, %s2465_s11  ;;  %v3276_v21 = vsub.f32 %v3057_v44, %v1285_v58 }
 0x2be   :  { %1076 = vrot.lane.b32.xlu0 %v3245_v16, %s2465_s11 }
 0x2c0   :  { %v1159_v9 = vpop.permute.xlu0 %1158  ;;  %1832 = vrot.lane.b32.xlu2 %v3181_v48, %s2465_s11 }
 0x2c1   :  { %v3252_v8 = vsub.f32 %v3059_v3, %v1159_v9 }
 0x2c2   :  { %v3254_v24 = vpop.permute.xlu1 %1320  ;;  %v1275_v25 = vpop.permute.xlu2 %1274 }
 0x2c3   :  { %1206 = vrot.lane.b32.xlu1 %v3252_v8, %s2465_s11  ;;  %v3271_v55 = vmul.f32 %v1275_v25, %v3057_v44 }
 0x2c6   :  { %1168 = vrot.lane.b32.xlu0 %v3259_v59, %s2464_s10 }
 0x2c8   :  { %v3266_v34 = vpop.permute.xlu0 %1194  ;;  %1166 = vrot.lane.b32.xlu2 %v3262_v26, %s2464_s10 }
 0x2ca   :  { %v1403_v5 = vpop.permute.xlu1 %1402  ;;  %v1277_v33 = vpop.permute.xlu2 %1276 }
 0x2cb   :  { %1294 = vrot.lane.b32.xlu1 %v3271_v55, %s2464_s10  ;;  %v3301_v13 = vmul.f32 %v1277_v33, %v3121_v32 }
 0x2cd   :  { %3607 = vst [vmem:[#allocation22_spill] sm:$0xff] %v3301_v13 }
 0x2ce   :  { %1332 = vrot.lane.b32.xlu0 %v3276_v21, %s2465_s11 }
 0x2d0   :  { %v1531_v11 = vpop.permute.xlu0 %1530  ;;  %1204 = vrot.lane.b32.xlu2 %v3279_v2, %s2465_s11 }
 0x2d1   :  { %v3289_v31 = vmul.f32 %v1531_v11, %v3077_v30 }
 0x2d2   :  { %v1533_v60 = vpop.permute.xlu2 %1532  ;;  %v1543_v57 = vpop.permute.xlu1 %1542 }
 0x2d3   :  { %v3286_v51 = vsub.f32 %v3095_v50, %v1543_v57  ;;  %3606 = vst [vmem:[#allocation21_spill] sm:$0xff] %v3289_v31  ;;  %v3308_v54 = vmul.f32 %v1533_v60, %v3095_v50 }
 0x2d5   :  { %3608 = vst [vmem:[#allocation23_spill] sm:$0xff] %v3308_v54 }
 0x2d6   :  { %1590 = vrot.lane.b32.xlu0 %v3286_v51, %s2465_s11 }
 0x2d8   :  { %v1541_v36 = vpop.permute.xlu0 %1540  ;;  %1550 = vrot.lane.b32.xlu2 %v3289_v31, %s2464_s10 }
 0x2d9   :  { %v3296_v39 = vsub.f32 %v3077_v30, %v1541_v36 }
 0x2da   :  { %v1287_v7 = vpop.permute.xlu2 %1286  ;;  %v1413_v29 = vpop.permute.xlu1 %1412 }
 0x2db   :  { %1588 = vrot.lane.b32.xlu1 %v3296_v39, %s2465_s11  ;;  %v3317_v25 = vsub.f32 %v3083_v45, %v1413_v29  ;;  %v3322_v11 = vsub.f32 %v3121_v32, %v1287_v7  ;;  %v3339_v7 = vmul.f32 %v1403_v5, %v3083_v45 }
 0x2dd   :  { %3614 = vst [vmem:[#allocation29_spill] sm:$0xff] %v3339_v7 }
 0x2e0   :  { %v3303_v18 = vpop.permute.xlu0 %1576  ;;  %1296 = vrot.lane.b32.xlu2 %v3301_v13, %s2464_s10 }
 0x2e2   :  { %v3310_v58 = vpop.permute.xlu2 %1322  ;;  %v3312_v9 = vpop.permute.xlu1 %1448 }
 0x2e3   :  { %3609 = vst [vmem:[#allocation24_spill] sm:$0xff] %v3310_v58  ;;  %1552 = vrot.lane.b32.xlu1 %v3308_v54, %s2464_s10 }
 0x2e4   :  { %3610 = vst [vmem:[#allocation25_spill] sm:$0xff] %v3312_v9 }
 0x2e8   :  { %v1915_v33 = vpop.permute.xlu0 %1914  ;;  %1460 = vrot.lane.b32.xlu2 %v3317_v25, %s2465_s11 }
 0x2e9   :  { %v3334_v29 = vmul.f32 %v1915_v33, %v3129_v47 }
 0x2ea   :  { %v3324_v57 = vpop.permute.xlu2 %1578  ;;  %v1659_v60 = vpop.permute.xlu1 %1658 }
 0x2eb   :  { %3611 = vst [vmem:[#allocation26_spill] sm:$0xff] %v3324_v57  ;;  %v3327_v36 = vmul.f32 %v1659_v60, %v3131_v63  ;;  %1334 = vrot.lane.b32.xlu1 %v3322_v11, %s2465_s11 }
 0x2ec   :  { %3613 = vst [vmem:[#allocation28_spill] sm:$0xff] %v3334_v29 }
 0x2ed   :  { %3612 = vst [vmem:[#allocation27_spill] sm:$0xff] %v3327_v36  ;;  %1678 = vrot.lane.b32.xlu0 %v3327_v36, %s2464_s10 }
 0x2f0   :  { %v1405_v48 = vpop.permute.xlu0 %1404  ;;  %1934 = vrot.lane.b32.xlu2 %v3334_v29, %s2464_s10 }
 0x2f1   :  { %v3344_v60 = vmul.f32 %v1405_v48, %v3139_v19 }
 0x2f2   :  { %v1925_v14 = vpop.permute.xlu2 %1924  ;;  %v3341_v27 = vpop.permute.xlu1 %1704 }
 0x2f3   :  { %3615 = vst [vmem:[#allocation30_spill] sm:$0xff] %v3341_v27  ;;  %1422 = vrot.lane.b32.xlu1 %v3339_v7, %s2464_s10  ;;  %v3351_v36 = vsub.f32 %v3129_v47, %v1925_v14 }
 0x2f4   :  { %3616 = vst [vmem:[#allocation31_spill] sm:$0xff] %v3344_v60 }
 0x2f5   :  { %1424 = vrot.lane.b32.xlu0 %v3344_v60, %s2464_s10 }
 0x2f8   :  { %v1669_v33 = vpop.permute.xlu0 %1668 }
 0x2f9   :  { %v3354_v56 = vsub.f32 %v3131_v63, %v1669_v33 }
 0x2fa   :  { %v3356_v5 = vpop.permute.xlu2 %1960  ;;  %v1927_v54 = vpop.permute.xlu1 %1926 }
 0x2fb   :  { %3617 = vst [vmem:[#allocation32_spill] sm:$0xff] %v3356_v5  ;;  %v3359_v27 = vsub.f32 %v3155_v53, %v1927_v54  ;;  %1972 = vrot.lane.b32.xlu1 %v3351_v36, %s2465_s11  ;;  %1716 = vrot.lane.b32.xlu2 %v3354_v56, %s2465_s11 }
 0x2fd   :  { %1974 = vrot.lane.b32.xlu0 %v3359_v27, %s2465_s11 }
 0x300   :  { %v1415_v48 = vpop.permute.xlu0 %1414 }
 0x301   :  { %v3368_v14 = vsub.f32 %v3139_v19, %v1415_v48 }
 0x302   :  { %v1917_v33 = vpop.permute.xlu2 %1916  ;;  %v3370_v60 = vpop.permute.xlu1 %1962 }
 0x303   :  { %3618 = vst [vmem:[#allocation33_spill] sm:$0xff] %v3370_v60  ;;  %1462 = vrot.lane.b32.xlu1 %v3368_v14, %s2465_s11  ;;  %v3377_v28 = vmul.f32 %v1917_v33, %v3155_v53 }
 0x305   :  { %3620 = vst [vmem:[#allocation35_spill] sm:$0xff] %v3377_v28 }
 0x308   :  { %v3374_v54 = vpop.permute.xlu0 %1450 }
 0x309   :  { %3619 = vst [vmem:[#allocation34_spill] sm:$0xff] %v3374_v54 }
 0x30a   :  { %v1797_v29 = vpop.permute.xlu1 %1796  ;;  %v1671_v61 = vpop.permute.xlu2 %1670 }
 0x30b   :  { %v3380_v5 = vsub.f32 %v3177_v46, %v1797_v29  ;;  %1936 = vrot.lane.b32.xlu1 %v3377_v28, %s2464_s10  ;;  %v3387_v60 = vsub.f32 %v3193_v6, %v1671_v61 }
 0x30d   :  { %1844 = vrot.lane.b32.xlu0 %v3380_v5, %s2465_s11 }
 0x310   :  { %v1661_v48 = vpop.permute.xlu0 %1660 }
 0x311   :  { %v3390_v54 = vmul.f32 %v1661_v48, %v3193_v6 }
 0x312   :  { %v1789_v33 = vpop.permute.xlu1 %1788  ;;  %v1787_v29 = vpop.permute.xlu2 %1786 }
 0x313   :  { %3621 = vst [vmem:[#allocation36_spill] sm:$0xff] %v3390_v54  ;;  %v3393_v10 = vmul.f32 %v1789_v33, %v3195_v49  ;;  %1718 = vrot.lane.b32.xlu1 %v3387_v60, %s2465_s11  ;;  %1680 = vrot.lane.b32.xlu2 %v3390_v54, %s2464_s10  ;;  %v3404_v61 = vmul.f32 %v1787_v29, %v3177_v46 }
 0x315   :  { %3622 = vst [vmem:[#allocation37_spill] sm:$0xff] %v3393_v10  ;;  %1808 = vrot.lane.b32.xlu0 %v3393_v10, %s2464_s10 }
 0x316   :  { %3624 = vst [vmem:[#allocation39_spill] sm:$0xff] %v3404_v61 }
 0x318   :  { %v3401_v28 = vpop.permute.xlu0 %1706 }
 0x319   :  { %3623 = vst [vmem:[#allocation38_spill] sm:$0xff] %v3401_v28 }
 0x31a   :  { %v3408_v48 = vpop.permute.xlu1 %1834  ;;  %v3410_v33 = vpop.permute.xlu2 %1832 }
 0x31b   :  { %1806 = vrot.lane.b32.xlu1 %v3404_v61, %s2464_s10  ;;  %3625 = vst [vmem:[#allocation40_spill] sm:$0xff] %v3408_v48 }
 0x31c   :  { %3626 = vst [vmem:[#allocation41_spill] sm:$0xff] %v3410_v33 }
 0x320   :  { %v1799_v57 = vpop.permute.xlu0 %1798 }
 0x321   :  { %v3413_v52 = vsub.f32 %v3195_v49, %v1799_v57 }
 0x322   :  { %v1167_v13 = vpop.permute.xlu2 %1166 }
 0x323   :  { %1846 = vrot.lane.b32.xlu2 %v3413_v52, %s2465_s11 }
 0x325   :  { %v1041_v10 = vpop.permute.xlu1 %1040 }
 0x326   :  { %v1045_v54 = vsub.f32 %v3045_v38, %v1041_v10 }
 0x328   :  { %v1051_v28 = vmul.f32 2.0, %v1045_v54  ;;  %v1039_v29 = vpop.permute.xlu0 %1038 }
 0x329   :  { %v1044_v7 = vsub.f32 %v3033_v42, %v1039_v29  ;;  %v1172_v42 = vsub.f32 %v3043_v35, %v1167_v13 }
 0x32a   :  { %v1053_v61 = vadd.f32 0.0009, %v1051_v28  ;;  %v1205_v38 = vpop.permute.xlu2 %1204 }
 0x32b   :  { %v1050_v58 = vmul.f32 2.0, %v1044_v7  ;;  %v1210_v7 = vadd.f32 %v1205_v38, %v3279_v2 }
 0x32c   :  { %1058 = vrot.lane.b32.xlu0 %v1053_v61, %s2464_s10 }
 0x32d   :  { %v1052_v33 = vadd.f32 0.0009, %v1050_v58  ;;  %v1079_v48 = vpop.permute.xlu1 %1078  ;;  %v1212_v54 = vadd.f32 0.0009, %v1210_v7 }
 0x32e   :  { %v1083_v57 = vadd.f32 %v1079_v48, %v3238_v23  ;;  %v1178_v23 = vmul.f32 2.0, %v1172_v42 }
 0x32f   :  { %1056 = vrot.lane.b32.xlu2 %v1052_v33, %s2464_s10 }
 0x330   :  { %v1077_v1 = vpop.permute.xlu0 %1076  ;;  %v1085_v9 = vadd.f32 0.0009, %v1083_v57 }
 0x331   :  { %v1082_v31 = vadd.f32 %v1077_v1, %v3245_v16  ;;  %v1180_v1 = vadd.f32 0.0009, %v1178_v23 }
 0x332   :  { %v1551_v16 = vpop.permute.xlu2 %1550 }
 0x333   :  { %v1084_v10 = vadd.f32 0.0009, %v1082_v31 }
 0x334   :  { %1090 = vrot.lane.b32.xlu0 %v1085_v9, %s2466_s12 }
 0x335   :  { %v1207_v28 = vpop.permute.xlu1 %1206 }
 0x336   :  { %v1211_v2 = vadd.f32 %v1207_v28, %v3252_v8 }
 0x337   :  { %1088 = vrot.lane.b32.xlu2 %v1084_v10, %s2466_s12 }
 0x338   :  { %v1169_v58 = vpop.permute.xlu0 %1168 }
 0x339   :  { %v1173_v61 = vsub.f32 %v3059_v3, %v1169_v58  ;;  %v1213_v3 = vadd.f32 0.0009, %v1211_v2 }
 0x33a   :  { %v1297_v57 = vpop.permute.xlu2 %1296 }
 0x33b   :  { %v1179_v33 = vmul.f32 2.0, %v1173_v61  ;;  %v1301_v61 = vsub.f32 %v3121_v32, %v1297_v57 }
 0x33c   :  { %1216 = vrot.lane.b32.xlu0 %v1212_v54, %s2466_s12 }
 0x33d   :  { %v1295_v48 = vpop.permute.xlu1 %1294  ;;  %v1181_v31 = vadd.f32 0.0009, %v1179_v33 }
 0x33e   :  { %v1300_v9 = vsub.f32 %v3057_v44, %v1295_v48  ;;  %v1556_v44 = vsub.f32 %v3077_v30, %v1551_v16  ;;  %v1307_v16 = vmul.f32 2.0, %v1301_v61 }
 0x33f   :  { %1184 = vrot.lane.b32.xlu2 %v1180_v1, %s2464_s10 }
 0x340   :  { %v1306_v35 = vmul.f32 2.0, %v1300_v9  ;;  %v1333_v29 = vpop.permute.xlu0 %1332  ;;  %v1562_v28 = vmul.f32 2.0, %v1556_v44 }
 0x341   :  { %v1338_v38 = vadd.f32 %v1333_v29, %v3276_v21 }
 0x342   :  { %v1308_v13 = vadd.f32 0.0009, %v1306_v35  ;;  %v1461_v58 = vpop.permute.xlu2 %1460  ;;  %v1564_v54 = vadd.f32 0.0009, %v1562_v28 }
 0x343   :  { %v1340_v42 = vadd.f32 0.0009, %v1338_v38  ;;  %v1466_v23 = vadd.f32 %v1461_v58, %v3317_v25 }
 0x344   :  { %1186 = vrot.lane.b32.xlu0 %v1181_v31, %s2464_s10  ;;  %1312 = vrot.lane.b32.xlu1 %v1308_v13, %s2464_s10 }
 0x345   :  { %v1468_v30 = vadd.f32 0.0009, %v1466_v23 }
 0x347   :  { %1218 = vrot.lane.b32.xlu2 %v1213_v3, %s2466_s12 }
 0x348   :  { %v1591_v21 = vpop.permute.xlu0 %1590 }
 0x349   :  { %v1595_v35 = vadd.f32 %v1591_v21, %v3286_v51 }
 0x34a   :  { %v1935_v32 = vpop.permute.xlu2 %1934 }
 0x34b   :  { %v1597_v2 = vadd.f32 0.0009, %v1595_v35 }
 0x34d   :  { %v1589_v10 = vpop.permute.xlu1 %1588 }
 0x34e   :  { %v1594_v7 = vadd.f32 %v1589_v10, %v3296_v39  ;;  %v1309_v39 = vadd.f32 0.0009, %v1307_v16 }
 0x34f   :  { %1344 = vrot.lane.b32.xlu2 %v1340_v42, %s2466_s12 }
 0x350   :  { %v1596_v8 = vadd.f32 0.0009, %v1594_v7 }
 0x352   :  { %1600 = vrot.lane.b32.xlu0 %v1596_v8, %s2466_s12 }
 0x355   :  { %v1553_v1 = vpop.permute.xlu1 %1552  ;;  %v1717_v44 = vpop.permute.xlu2 %1716 }
 0x356   :  { %v1722_v10 = vadd.f32 %v1717_v44, %v3354_v56 }
 0x357   :  { %1568 = vrot.lane.b32.xlu2 %v1564_v54, %s2464_s10 }
 0x358   :  { %v1724_v7 = vadd.f32 0.0009, %v1722_v10  ;;  %v1046_v10 = vmul.f32 2.0, %v3231_v12 }
 0x35a   :  { %1472 = vrot.lane.b32.xlu0 %v1468_v30, %s2466_s12  ;;  %v1557_v30 = vsub.f32 %v3095_v50, %v1553_v1  ;;  %v1070_v50 = vadd.f32 %v3226_v0, %v3039_v43 }
 0x35d   :  { %v1335_v48 = vpop.permute.xlu1 %1334 }
 0x35e   :  { %v1339_v33 = vadd.f32 %v1335_v48, %v3322_v11 }
 0x35f   :  { %v3445_v9 = vpop.permute.xlu0 %1678  ;;  %1314 = vrot.lane.b32.xlu2 %v1309_v39, %s2464_s10 }
 0x360   :  { %v1341_v25 = vadd.f32 0.0009, %v1339_v33  ;;  %v1563_v33 = vmul.f32 2.0, %v1557_v30  ;;  %v1684_v0 = vsub.f32 %v3131_v63, %v3445_v9 }
 0x362   :  { %1346 = vrot.lane.b32.xlu1 %v1341_v25, %s2466_s12 }
 0x365   :  { %v1423_v31 = vpop.permute.xlu1 %1422 }
 0x366   :  { %v1428_v13 = vsub.f32 %v3083_v45, %v1423_v31 }
 0x367   :  { %v1425_v3 = vpop.permute.xlu0 %1424  ;;  %1602 = vrot.lane.b32.xlu2 %v1597_v2, %s2466_s12 }
 0x368   :  { %v1434_v29 = vmul.f32 2.0, %v1428_v13  ;;  %v1429_v11 = vsub.f32 %v3139_v19, %v1425_v3 }
 0x36a   :  { %v1436_v57 = vadd.f32 0.0009, %v1434_v29  ;;  %v1435_v38 = vmul.f32 2.0, %v1429_v11 }
 0x36c   :  { %v1437_v42 = vadd.f32 0.0009, %v1435_v38  ;;  %1440 = vrot.lane.b32.xlu1 %v1436_v57, %s2464_s10 }
 0x36d   :  { %v1973_v51 = vpop.permute.xlu1 %1972  ;;  %v1681_v45 = vpop.permute.xlu2 %1680 }
 0x36e   :  { %1442 = vrot.lane.b32.xlu0 %v1437_v42, %s2464_s10  ;;  %v1978_v28 = vadd.f32 %v1973_v51, %v3351_v36  ;;  %v1685_v56 = vsub.f32 %v3193_v6, %v1681_v45  ;;  %v1565_v6 = vadd.f32 0.0009, %v1563_v33 }
 0x36f   :  { %v1975_v48 = vpop.permute.xlu0 %1974 }
 0x370   :  { %v1980_v58 = vadd.f32 0.0009, %v1978_v28  ;;  %v1691_v39 = vmul.f32 2.0, %v1685_v56  ;;  %v1979_v31 = vadd.f32 %v1975_v48, %v3359_v27  ;;  %v1690_v28 = vmul.f32 2.0, %v1684_v0 }
 0x371   :  { %v1071_v56 = vadd.f32 %v3203_v41, %v3051_v15 }
 0x372   :  { %v1693_v35 = vadd.f32 0.0009, %v1691_v39  ;;  %v1981_v29 = vadd.f32 0.0009, %v1979_v31  ;;  %v1692_v12 = vadd.f32 0.0009, %v1690_v28 }
 0x373   :  { %v1073_v39 = vadd.f32 0.0001, %v1071_v56  ;;  %v1302_v31 = vmul.f32 2.0, %v3271_v55 }
 0x374   :  { %1728 = vrot.lane.b32.xlu1 %v1724_v7, %s2466_s12 }
 0x375   :  { %v1463_v8 = vpop.permute.xlu1 %1462 }
 0x376   :  { %v1467_v54 = vadd.f32 %v1463_v8, %v3368_v14  ;;  %v1940_v14 = vsub.f32 %v3129_v47, %v1935_v32  ;;  %v1072_v32 = vadd.f32 0.0001, %v1070_v50 }
 0x378   :  { %v1469_v16 = vadd.f32 0.0009, %v1467_v54  ;;  %v1946_v1 = vmul.f32 2.0, %v1940_v14 }
 0x37a   :  { %v1948_v3 = vadd.f32 0.0009, %v1946_v1  ;;  %v1175_v1 = vmul.f32 2.0, %v3259_v59 }
 0x37c   :  { %1984 = vrot.lane.b32.xlu1 %v1980_v58, %s2466_s12  ;;  %v1048_v58 = vadd.f32 0.0001, %v1046_v10 }
 0x37d   :  { %v1847_v19 = vpop.permute.xlu2 %1846  ;;  %v1937_v23 = vpop.permute.xlu1 %1936 }
 0x37e   :  { %v1851_v61 = vadd.f32 %v1847_v19, %v3413_v52  ;;  %v1941_v38 = vsub.f32 %v3155_v53, %v1937_v23 }
 0x37f   :  { %v1845_v13 = vpop.permute.xlu0 %1844 }
 0x380   :  { %v1853_v21 = vadd.f32 0.0009, %v1851_v61  ;;  %v1850_v43 = vadd.f32 %v1845_v13, %v3380_v5  ;;  %v1947_v27 = vmul.f32 2.0, %v1941_v38  ;;  %v1199_v5 = vadd.f32 %v3266_v34, %v3073_v62 }
 0x381   :  { %v1326_v62 = vadd.f32 %v3254_v24, %v3063_v20  ;;  %v1047_v20 = vmul.f32 2.0, %v3224_v17  ;;  %v1304_v17 = vadd.f32 0.0001, %v1302_v31 }
 0x382   :  { %1858 = vrot.lane.b32.xlu2 %v1853_v21, %s2466_s12  ;;  %v1852_v51 = vadd.f32 0.0009, %v1850_v43  ;;  %v1949_v45 = vadd.f32 0.0009, %v1947_v27  ;;  %v1201_v54 = vadd.f32 0.0001, %v1199_v5 }
 0x383   :  { %v1328_v33 = vadd.f32 0.0001, %v1326_v62  ;;  %v3628_v62 = vld [vmem:[#allocation21_spill] sm:$0xff] }
 0x384   :  { %1474 = vrot.lane.b32.xlu1 %v1469_v16, %s2466_s12 }
 0x385   :  { %v1719_v36 = vpop.permute.xlu1 %1718 }
 0x386   :  { %v1723_v25 = vadd.f32 %v1719_v36, %v3387_v60 }
 0x388   :  { %v1725_v52 = vadd.f32 0.0009, %v1723_v25 }
 0x389   :  { %v1057_v2 = vpop.permute.xlu2 %1056 }
 0x38a   :  { %1698 = vrot.lane.b32.xlu2 %v1693_v35, %s2464_s10  ;;  %1730 = vrot.lane.b32.xlu0 %v1725_v52, %s2466_s12  ;;  %v1062_v63 = vmul.f32 %v1057_v2, %v1048_v58 }
 0x38c   :  { %1570 = vrot.lane.b32.xlu1 %v1565_v6, %s2464_s10 }
 0x38d   :  { %v1807_v60 = vpop.permute.xlu1 %1806 }
 0x38e   :  { %v1812_v47 = vsub.f32 %v3177_v46, %v1807_v60  ;;  %v1809_v46 = vpop.permute.xlu0 %1808 }
 0x38f   :  { %v1813_v61 = vsub.f32 %v3195_v49, %v1809_v46  ;;  %v1198_v49 = vadd.f32 %v3240_v37, %v3089_v40  ;;  %v1049_v37 = vadd.f32 0.0001, %v1047_v20 }
 0x390   :  { %v1818_v11 = vmul.f32 2.0, %v1812_v47 }
 0x391   :  { %v1089_v57 = vpop.permute.xlu2 %1088  ;;  %v1819_v34 = vmul.f32 2.0, %v1813_v61  ;;  %v1200_v35 = vadd.f32 0.0001, %v1198_v49 }
 0x392   :  { %v1820_v44 = vadd.f32 0.0009, %v1818_v11  ;;  %v1094_v42 = vmul.f32 %v1089_v57, %v1072_v32  ;;  %1952 = vrot.lane.b32.xlu2 %v1948_v3, %s2464_s10  ;;  %1986 = vrot.lane.b32.xlu0 %v1981_v29, %s2466_s12  ;;  %v1177_v11 = vadd.f32 0.0001, %v1175_v1  ;;  %v1174_v57 = vmul.f32 2.0, %v3262_v26 }
 0x393   :  { %v1821_v25 = vadd.f32 0.0009, %v1819_v34  ;;  %v1558_v34 = vmul.f32 2.0, %v3628_v62 }
 0x394   :  { %2321 = vrcp.f32 %v1094_v42  ;;  %1824 = vrot.lane.b32.xlu1 %v1820_v44, %s2464_s10  ;;  %v1176_v5 = vadd.f32 0.0001, %v1174_v57 }
 0x395   :  { %v1560_v49 = vadd.f32 0.0001, %v1558_v34  ;;  %v3640_v34 = vld [vmem:[#allocation19_spill] sm:$0xff] }
 0x399   :  { %v3482_v53 = vpop.permute.xlu2 %1184 }
 0x39a   :  { %v2322_v7 = vpop.eup %2321  ;;  %1856 = vrot.lane.b32.xlu0 %v1852_v51, %s2466_s12  ;;  %v1190_v26 = vmul.f32 %v3482_v53, %v1176_v5  ;;  %v3635_v5 = vld [vmem:[#allocation18_spill] sm:$0xff] }
 0x39b   :  { %v1098_v8 = vmul.f32 %v2322_v7, %v1094_v42 }
 0x39c   :  { %1954 = vrot.lane.b32.xlu1 %v1949_v45, %s2464_s10 }
 0x39d   :  { %v1100_v19 = vsub.f32 2.0, %v1098_v8 }
 0x39e   :  { %v1059_v23 = vpop.permute.xlu0 %1058 }
 0x39f   :  { %v1102_v9 = vmul.f32 %v2322_v7, %v1100_v19  ;;  %v1063_v32 = vmul.f32 %v1059_v23, %v1049_v37  ;;  %v1582_v23 = vadd.f32 %v3303_v18, %v3109_v4 }
 0x3a1   :  { %v1219_v21 = vpop.permute.xlu2 %1218  ;;  %v1104_v30 = vmul.f32 %v1102_v9, %v1062_v63 }
 0x3a2   :  { %v1223_v16 = vmul.f32 %v1219_v21, %v1201_v54  ;;  %1696 = vrot.lane.b32.xlu0 %v1692_v12, %s2464_s10  ;;  %v1584_v12 = vadd.f32 0.0001, %v1582_v23  ;;  %v3627_v21 = vld [vmem:[#allocation25_spill] sm:$0xff] }
 0x3a3   :  { %v1106_v51 = vsel %vm162_vm0, %v1104_v30, 0.0  ;;  %v1454_v30 = vadd.f32 %v3627_v21, %v3115_v22 }
 0x3a4   :  { %2323 = vrcp.f32 %v1223_v16 }
 0x3a5   :  { %v1456_v53 = vadd.f32 0.0001, %v1454_v30  ;;  %v3639_v30 = vld [vmem:[#allocation28_spill] sm:$0xff] }
 0x3a6   :  { %v1091_v48 = vpop.permute.xlu0 %1090 }
 0x3a7   :  { %v1095_v36 = vmul.f32 %v1091_v48, %v1073_v39 }
 0x3a9   :  { %2325 = vrcp.f32 %v1095_v36  ;;  %v1345_v15 = vpop.permute.xlu2 %1344 }
 0x3aa   :  { %v1350_v41 = vmul.f32 %v1345_v15, %v1328_v33  ;;  %1826 = vrot.lane.b32.xlu0 %v1821_v25, %s2464_s10  ;;  %v2324_v14 = vpop.eup %2323  ;;  %v3630_v33 = vld [vmem:[#allocation24_spill] sm:$0xff] }
 0x3ab   :  { %v1227_v2 = vmul.f32 %v2324_v14, %v1223_v16 }
 0x3ac   :  { %2327 = vrcp.f32 %v1350_v41 }
 0x3ad   :  { %v1229_v60 = vsub.f32 2.0, %v1227_v2 }
 0x3ae   :  { %v1217_v24 = vpop.permute.xlu0 %1216 }
 0x3af   :  { %v2326_v52 = vpop.eup %2325  ;;  %v1222_v6 = vmul.f32 %v1217_v24, %v1200_v35  ;;  %v1231_v27 = vmul.f32 %v2324_v14, %v1229_v60 }
 0x3b0   :  { %v1099_v50 = vmul.f32 %v2326_v52, %v1095_v36  ;;  %v3629_v36 = vld [vmem:[#allocation14_spill] sm:$0xff] }
 0x3b1   :  { %2329 = vrcp.f32 %v1222_v6  ;;  %v1569_v16 = vpop.permute.xlu2 %1568  ;;  %v1327_v25 = vadd.f32 %v3630_v33, %v3629_v36  ;;  %v3642_v33 = vld [vmem:[#allocation23_spill] sm:$0xff] }
 0x3b2   :  { %v2328_v40 = vpop.eup %2327  ;;  %v1101_v13 = vsub.f32 2.0, %v1099_v50  ;;  %v3631_v50 = vld [vmem:[#allocation29_spill] sm:$0xff] }
 0x3b3   :  { %v1354_v47 = vmul.f32 %v2328_v40, %v1350_v41  ;;  %v1574_v41 = vmul.f32 %v1569_v16, %v1560_v49  ;;  %v1329_v35 = vadd.f32 0.0001, %v1327_v25  ;;  %v1430_v1 = vmul.f32 2.0, %v3631_v50 }
 0x3b4   :  { %v1103_v3 = vmul.f32 %v2326_v52, %v1101_v13  ;;  %v1942_v16 = vmul.f32 2.0, %v3639_v30  ;;  %v1559_v25 = vmul.f32 2.0, %v3642_v33  ;;  %v3651_v30 = vld [vmem:[#allocation17_spill] sm:$0xff] }
 0x3b5   :  { %v1356_v29 = vsub.f32 2.0, %v1354_v47  ;;  %v1432_v47 = vadd.f32 0.0001, %v1430_v1 }
 0x3b6   :  { %v1187_v38 = vpop.permute.xlu0 %1186  ;;  %v1313_v44 = vpop.permute.xlu1 %1312  ;;  %v1105_v42 = vmul.f32 %v1103_v3, %v1063_v32 }
 0x3b7   :  { %v2330_v43 = vpop.eup %2329  ;;  %v1191_v59 = vmul.f32 %v1187_v38, %v1177_v11  ;;  %v1358_v55 = vmul.f32 %v2328_v40, %v1356_v29  ;;  %v1318_v46 = vmul.f32 %v1313_v44, %v1304_v17  ;;  %v3632_v40 = vld [vmem:[#allocation22_spill] sm:$0xff] }
 0x3b8   :  { %v1226_v0 = vmul.f32 %v2330_v43, %v1222_v6  ;;  %v1107_v10 = vsel %vm162_vm0, %v1105_v42, 0.0  ;;  %v1303_v37 = vmul.f32 2.0, %v3632_v40  ;;  %v3645_v40 = vld [vmem:[#allocation31_spill] sm:$0xff] }
 0x3b9   :  { %v1233_v7 = vmul.f32 %v1231_v27, %v1191_v59  ;;  %v1360_v45 = vmul.f32 %v1358_v55, %v1318_v46  ;;  %v1108_v8 = vadd.f32 %v1107_v10, %v1106_v51  ;;  %v1315_v20 = vpop.permute.xlu2 %1314  ;;  %v3634_v59 = vld [vmem:[#allocation26_spill] sm:$0xff] }
 0x3ba   :  { %v1228_v28 = vsub.f32 2.0, %v1226_v0  ;;  %v1305_v17 = vadd.f32 0.0001, %v1303_v37  ;;  %v1431_v37 = vmul.f32 2.0, %v3645_v40 }
 0x3bb   :  { %v1235_v9 = vsel %vm162_vm0, %v1233_v7, 0.0  ;;  %v1362_v51 = vsel %vm162_vm0, %v1360_v45, 0.0 }
 0x3bc   :  { %v1230_v58 = vmul.f32 %v2330_v43, %v1228_v28  ;;  %v1319_v44 = vmul.f32 %v1315_v20, %v1305_v17  ;;  %v3633_v43 = vld [vmem:[#allocation12_spill] sm:$0xff] }
 0x3bd   :  { %v1583_v27 = vadd.f32 %v3634_v59, %v3633_v43  ;;  %v3636_v28 = vld [vmem:[#allocation32_spill] sm:$0xff] }
 0x3be   :  { %v1232_v19 = vmul.f32 %v1230_v58, %v1190_v26  ;;  %v1966_v26 = vadd.f32 %v3636_v28, %v3635_v5  ;;  %v3648_v59 = vld [vmem:[#allocation20_spill] sm:$0xff] }
 0x3c0   :  { %v1234_v63 = vsel %vm162_vm0, %v1232_v19, 0.0  ;;  %v1968_v19 = vadd.f32 0.0001, %v1966_v26 }
 0x3c1   :  { %v1236_v54 = vadd.f32 %v1235_v9, %v1234_v63  ;;  %v1603_v60 = vpop.permute.xlu2 %1602 }
 0x3c4   :  { %v1601_v61 = vpop.permute.xlu0 %1600 }
 0x3c5   :  { %v1606_v56 = vmul.f32 %v1601_v61, %v1584_v12  ;;  %v3638_v12 = vld [vmem:[#allocation34_spill] sm:$0xff] }
 0x3c6   :  { %1109 = vadd.xlane.f32.xlu1 %v1108_v8  ;;  %v1585_v8 = vadd.f32 0.0001, %v1583_v27  ;;  %v3649_v27 = vld [vmem:[#allocation40_spill] sm:$0xff] }
 0x3c7   :  { %2331 = vrcp.f32 %v1606_v56 }
 0x3c8   :  { %v1607_v58 = vmul.f32 %v1603_v60, %v1585_v8  ;;  %v3650_v8 = vld [vmem:[#allocation36_spill] sm:$0xff] }
 0x3c9   :  { %v1687_v5 = vmul.f32 2.0, %v3650_v8 }
 0x3cc   :  { %v1473_v39 = vpop.permute.xlu0 %1472 }
 0x3cd   :  { %v2332_v48 = vpop.eup %2331  ;;  %v1478_v4 = vmul.f32 %v1473_v39, %v1456_v53  ;;  %v3641_v39 = vld [vmem:[#allocation38_spill] sm:$0xff] }
 0x3ce   :  { %v1610_v18 = vmul.f32 %v2332_v48, %v1606_v56 }
 0x3cf   :  { %2333 = vrcp.f32 %v1478_v4 }
 0x3d0   :  { %v1612_v15 = vsub.f32 2.0, %v1610_v18 }
 0x3d2   :  { %v1614_v14 = vmul.f32 %v2332_v48, %v1612_v15  ;;  %v1711_v48 = vadd.f32 %v3641_v39, %v3640_v34  ;;  %v3643_v15 = vld [vmem:[#allocation13_spill] sm:$0xff] }
 0x3d4   :  { %1237 = vadd.xlane.f32.xlu0 %v1236_v54  ;;  %v1347_v22 = vpop.permute.xlu1 %1346  ;;  %v3513_v24 = vmul.f32 %v1614_v14, %v1574_v41  ;;  %v3637_v54 = vld [vmem:[#allocation16_spill] sm:$0xff]  ;;  %v3644_v41 = vld [vmem:[#allocation30_spill] sm:$0xff] }
 0x3d5   :  { %v2334_v52 = vpop.eup %2333  ;;  %v1351_v2 = vmul.f32 %v1347_v22, %v1329_v35  ;;  %v1455_v61 = vadd.f32 %v3638_v12, %v3637_v54  ;;  %v1710_v14 = vadd.f32 %v3644_v41, %v3643_v15  ;;  %v1944_v35 = vadd.f32 0.0001, %v1942_v16  ;;  %v3652_v16 = vld [vmem:[#allocation41_spill] sm:$0xff] }
 0x3d6   :  { %v1482_v6 = vmul.f32 %v2334_v52, %v1478_v4  ;;  %v1713_v22 = vadd.f32 0.0001, %v1711_v48  ;;  %v1618_v26 = vsel %vm162_vm0, %v3513_v24, 0.0 }
 0x3d7   :  { %2335 = vrcp.f32 %v1351_v2  ;;  %v1457_v21 = vadd.f32 0.0001, %v1455_v61 }
 0x3d8   :  { %v1484_v31 = vsub.f32 2.0, %v1482_v6  ;;  %2337 = vrcp.f32 %v1607_v58 }
 0x3da   :  { %v1486_v29 = vmul.f32 %v2334_v52, %v1484_v31  ;;  %v1561_v31 = vadd.f32 0.0001, %v1559_v25  ;;  %v3653_v25 = vld [vmem:[#allocation35_spill] sm:$0xff] }
 0x3dc   :  { %v3521_v46 = vpop.permute.xlu2 %1858 }
 0x3dd   :  { %v2336_v13 = vpop.eup %2335 }
 0x3de   :  { %v1355_v32 = vmul.f32 %v2336_v13, %v1351_v2  ;;  %v1441_v3 = vpop.permute.xlu1 %1440  ;;  %v2338_v45 = vpop.eup %2337 }
 0x3df   :  { %v1446_v11 = vmul.f32 %v1441_v3, %v1432_v47  ;;  %v1611_v4 = vmul.f32 %v2338_v45, %v1607_v58  ;;  %v3646_v3 = vld [vmem:[#allocation15_spill] sm:$0xff] }
 0x3e0   :  { %v1357_v57 = vsub.f32 2.0, %v1355_v32  ;;  %v1443_v56 = vpop.permute.xlu0 %1442 }
 0x3e1   :  { %v3517_v38 = vmul.f32 %v1486_v29, %v1446_v11  ;;  %v1613_v52 = vsub.f32 2.0, %v1611_v4  ;;  %v3647_v29 = vld [vmem:[#allocation33_spill] sm:$0xff] }
 0x3e2   :  { %v1359_v42 = vmul.f32 %v2336_v13, %v1357_v57  ;;  %v1712_v13 = vadd.f32 0.0001, %v1710_v14  ;;  %v1967_v11 = vadd.f32 %v3647_v29, %v3646_v3 }
 0x3e3   :  { %v1615_v17 = vmul.f32 %v2338_v45, %v1613_v52  ;;  %v1490_v24 = vsel %vm162_vm0, %v3517_v38, 0.0  ;;  %v3654_v38 = vld [vmem:[#allocation27_spill] sm:$0xff] }
 0x3e4   :  { %v1361_v55 = vmul.f32 %v1359_v42, %v1319_v44  ;;  %v3527_v63 = vpop.permute.xlu2 %1698 }
 0x3e6   :  { %v1729_v0 = vpop.permute.xlu1 %1728  ;;  %v1363_v10 = vsel %vm162_vm0, %v1361_v55, 0.0  ;;  %v1839_v55 = vadd.f32 %v3649_v27, %v3648_v59 }
 0x3e7   :  { %v1364_v7 = vadd.f32 %v1363_v10, %v1362_v51  ;;  %v1734_v44 = vmul.f32 %v1729_v0, %v1712_v13  ;;  %v1433_v51 = vadd.f32 0.0001, %v1431_v37  ;;  %v3655_v37 = vld [vmem:[#allocation39_spill] sm:$0xff] }
 0x3e8   :  { %v1841_v12 = vadd.f32 0.0001, %v1839_v55  ;;  %v1814_v13 = vmul.f32 2.0, %v3655_v37 }
 0x3e9   :  { %1365 = vadd.xlane.f32.xlu2 %v1364_v7  ;;  %v1969_v7 = vadd.f32 0.0001, %v1967_v11  ;;  %v1447_v58 = vmul.f32 %v1443_v56, %v1433_v51 }
 0x3ea   :  { %v1863_v34 = vmul.f32 %v3521_v46, %v1841_v12  ;;  %v1816_v51 = vadd.f32 0.0001, %v1814_v13 }
 0x3ec   :  { %v1953_v49 = vpop.permute.xlu2 %1952 }
 0x3ed   :  { %v1958_v2 = vmul.f32 %v1953_v49, %v1944_v35  ;;  %v1943_v49 = vmul.f32 2.0, %v3653_v25 }
 0x3ee   :  { %v1985_v23 = vpop.permute.xlu1 %1984 }
 0x3ef   :  { %v1990_v9 = vmul.f32 %v1985_v23, %v1968_v19 }
 0x3f1   :  { %2339 = vrcp.f32 %v1990_v9 }
 0x3f6   :  { %v1475_v53 = vpop.permute.xlu1 %1474 }
 0x3f7   :  { %v2340_v62 = vpop.eup %2339  ;;  %v1479_v18 = vmul.f32 %v1475_v53, %v1457_v21  ;;  %v1838_v53 = vadd.f32 %v3652_v16, %v3651_v30 }
 0x3f8   :  { %v1994_v36 = vmul.f32 %v2340_v62, %v1990_v9 }
 0x3f9   :  { %2341 = vrcp.f32 %v1479_v18  ;;  %v1840_v33 = vadd.f32 0.0001, %v1838_v53 }
 0x3fa   :  { %v1996_v20 = vsub.f32 2.0, %v1994_v36 }
 0x3fc   :  { %v1998_v6 = vmul.f32 %v2340_v62, %v1996_v20  ;;  %v1731_v50 = vpop.permute.xlu0 %1730  ;;  %v1689_v62 = vadd.f32 0.0001, %v1687_v5 }
 0x3fd   :  { %v1735_v1 = vmul.f32 %v1731_v50, %v1713_v22  ;;  %v1686_v22 = vmul.f32 2.0, %v3654_v38 }
 0x3fe   :  { %v1571_v60 = vpop.permute.xlu1 %1570  ;;  %v3538_v47 = vmul.f32 %v1998_v6, %v1958_v2  ;;  %v1945_v6 = vadd.f32 0.0001, %v1943_v49 }
 0x3ff   :  { %v2342_v32 = vpop.eup %2341  ;;  %2343 = vrcp.f32 %v1735_v1  ;;  %v1575_v57 = vmul.f32 %v1571_v60, %v1561_v31  ;;  %v1688_v40 = vadd.f32 0.0001, %v1686_v22 }
 0x400   :  { %v1483_v42 = vmul.f32 %v2342_v32, %v1479_v18  ;;  %2345 = vrcp.f32 %v1734_v44  ;;  %v1703_v18 = vmul.f32 %v3527_v63, %v1689_v62 }
 0x401   :  { %v1617_v43 = vmul.f32 %v1615_v17, %v1575_v57 }
 0x402   :  { %v1485_v10 = vsub.f32 2.0, %v1483_v42  ;;  %v2002_v42 = vsel %vm162_vm0, %v3538_v47, 0.0 }
 0x403   :  { %v1619_v28 = vsel %vm162_vm0, %v1617_v43, 0.0  ;;  %v3656_v43 = vld [vmem:[#allocation37_spill] sm:$0xff] }
 0x404   :  { %v1487_v19 = vmul.f32 %v2342_v32, %v1485_v10  ;;  %v1987_v23 = vpop.permute.xlu0 %1986  ;;  %v1620_v0 = vadd.f32 %v1619_v28, %v1618_v26  ;;  %v1815_v59 = vmul.f32 2.0, %v3656_v43 }
 0x405   :  { %v2344_v9 = vpop.eup %2343  ;;  %v1991_v54 = vmul.f32 %v1987_v23, %v1969_v7 }
 0x406   :  { %v1739_v61 = vmul.f32 %v2344_v9, %v1735_v1  ;;  %1621 = vadd.xlane.f32.xlu2 %v1620_v0  ;;  %v1825_v45 = vpop.permute.xlu1 %1824  ;;  %v1489_v21 = vmul.f32 %v1487_v19, %v1447_v58  ;;  %v2346_v4 = vpop.eup %2345  ;;  %v1817_v19 = vadd.f32 0.0001, %v1815_v59 }
 0x407   :  { %2347 = vrcp.f32 %v1991_v54  ;;  %v1738_v46 = vmul.f32 %v2346_v4, %v1734_v44  ;;  %v1830_v28 = vmul.f32 %v1825_v45, %v1816_v51 }
 0x408   :  { %v1741_v56 = vsub.f32 2.0, %v1739_v61  ;;  %v1491_v39 = vsel %vm162_vm0, %v1489_v21, 0.0  ;;  %2349 = vrcp.f32 %v1863_v34 }
 0x409   :  { %v1492_v48 = vadd.f32 %v1491_v39, %v1490_v24  ;;  %v1740_v50 = vsub.f32 2.0, %v1738_v46 }
 0x40a   :  { %v1743_v36 = vmul.f32 %v2344_v9, %v1741_v56 }
 0x40b   :  { %1493 = vadd.xlane.f32.xlu0 %v1492_v48  ;;  %v1742_v17 = vmul.f32 %v2346_v4, %v1740_v50 }
 0x40c   :  { %v1857_v15 = vpop.permute.xlu0 %1856  ;;  %v1745_v41 = vmul.f32 %v1743_v36, %v1703_v18 }
 0x40d   :  { %v2348_v14 = vpop.eup %2347  ;;  %v1862_v35 = vmul.f32 %v1857_v15, %v1840_v33 }
 0x40e   :  { %v1995_v20 = vmul.f32 %v2348_v14, %v1991_v54  ;;  %v1955_v52 = vpop.permute.xlu1 %1954  ;;  %v2350_v63 = vpop.eup %2349  ;;  %v1747_v5 = vsel %vm162_vm0, %v1745_v41, 0.0 }
 0x40f   :  { %2351 = vrcp.f32 %v1862_v35  ;;  %v1959_v31 = vmul.f32 %v1955_v52, %v1945_v6  ;;  %v1867_v29 = vmul.f32 %v2350_v63, %v1863_v34 }
 0x410   :  { %v1997_v2 = vsub.f32 2.0, %v1995_v20 }
 0x411   :  { %v1869_v7 = vsub.f32 2.0, %v1867_v29 }
 0x412   :  { %v1999_v1 = vmul.f32 %v2348_v14, %v1997_v2 }
 0x413   :  { %v1871_v47 = vmul.f32 %v2350_v63, %v1869_v7 }
 0x414   :  { %v2001_v60 = vmul.f32 %v1999_v1, %v1959_v31  ;;  %v1697_v32 = vpop.permute.xlu0 %1696 }
 0x415   :  { %v2352_v3 = vpop.eup %2351  ;;  %v1702_v11 = vmul.f32 %v1697_v32, %v1688_v40 }
 0x416   :  { %v1866_v57 = vmul.f32 %v2352_v3, %v1862_v35  ;;  %v2003_v44 = vsel %vm162_vm0, %v2001_v60, 0.0 }
 0x417   :  { %v1744_v27 = vmul.f32 %v1742_v17, %v1702_v11  ;;  %v2004_v55 = vadd.f32 %v2003_v44, %v2002_v42 }
 0x418   :  { %v1868_v10 = vsub.f32 2.0, %v1866_v57 }
 0x419   :  { %v1746_v8 = vsel %vm162_vm0, %v1744_v27, 0.0  ;;  %2005 = vadd.xlane.f32.xlu2 %v2004_v55 }
 0x41a   :  { %v1870_v26 = vmul.f32 %v2352_v3, %v1868_v10  ;;  %v1748_v58 = vadd.f32 %v1747_v5, %v1746_v8 }
 0x41c   :  { %v1827_v23 = vpop.permute.xlu0 %1826  ;;  %1749 = vadd.xlane.f32.xlu1 %v1748_v58  ;;  %v1872_v0 = vmul.f32 %v1870_v26, %v1830_v28 }
 0x41d   :  { %v1831_v9 = vmul.f32 %v1827_v23, %v1817_v19 }
 0x41e   :  { %v1874_v61 = vsel %vm162_vm0, %v1872_v0, 0.0 }
 0x41f   :  { %v1873_v54 = vmul.f32 %v1871_v47, %v1831_v9 }
 0x421   :  { %v1875_v12 = vsel %vm162_vm0, %v1873_v54, 0.0 }
 0x422   :  { %v1876_v21 = vadd.f32 %v1875_v12, %v1874_v61 }
 0x424   :  { %1877 = vadd.xlane.f32.xlu0 %v1876_v21 }
 0x439   :  { %v1110_v30 = vpop.xlane.xlu1 %1109 }
 0x43a   :  { %v1111_v16 = vrot.slane %v1110_v30, 4 }
 0x43c   :  { %v1112_v53 = vadd.f32 %v1111_v16, %v1110_v30 }
 0x43e   :  { %v1113_v62 = vrot.slane %v1112_v53, 2 }
 0x440   :  { %v1114_v45 = vadd.f32 %v1113_v62, %v1112_v53 }
 0x442   :  { %v1115_v34 = vrot.slane %v1114_v45, 1 }
 0x444   :  { %v1116_v24 = vadd.f32 %v1115_v34, %v1114_v45 }
 0x446   :  { %2133 = vpush %v1116_v24 }
 0x447   :  { %v1238_v56 = vpop.xlane.xlu0 %1237 }
 0x448   :  { %v1239_v39 = vrot.slane %v1238_v56, 4 }
 0x44a   :  { %v1240_v48 = vadd.f32 %v1239_v39, %v1238_v56 }
 0x44c   :  { %v1241_v4 = vrot.slane %v1240_v48, 2 }
 0x44e   :  { %v1242_v18 = vadd.f32 %v1241_v4, %v1240_v48 }
 0x450   :  { %v1243_v36 = vrot.slane %v1242_v18, 1 }
 0x452   :  { %v1244_v33 = vadd.f32 %v1243_v36, %v1242_v18 }
 0x454   :  { %2135 = vpush %v1244_v33 }
 0x45c   :  { %v1366_v25 = vpop.xlane.xlu2 %1365 }
 0x45d   :  { %v1367_v49 = vrot.slane %v1366_v25, 4 }
 0x45f   :  { %v1368_v15 = vadd.f32 %v1367_v49, %v1366_v25 }
 0x461   :  { %v1369_v41 = vrot.slane %v1368_v15, 2 }
 0x463   :  { %v1370_v14 = vadd.f32 %v1369_v41, %v1368_v15 }
 0x465   :  { %v1371_v46 = vrot.slane %v1370_v14, 1 }
 0x467   :  { %v1372_v35 = vadd.f32 %v1371_v46, %v1370_v14 }
 0x469   :  { %2137 = vpush %v1372_v35 }
 0x477   :  { %s2134_s13 = spop %2133 }
 0x479   :  { %v1622_v20 = vpop.xlane.xlu2 %1621 }
 0x47a   :  { %v1623_v38 = vrot.slane %v1622_v20, 4 }
 0x47c   :  { %v1624_v22 = vadd.f32 %v1623_v38, %v1622_v20 }
 0x47e   :  { %v1625_v52 = vrot.slane %v1624_v22, 2  ;;  %v1494_v2 = vpop.xlane.xlu0 %1493 }
 0x47f   :  { %v1495_v6 = vrot.slane %v1494_v2, 4 }
 0x480   :  { %v1626_v63 = vadd.f32 %v1625_v52, %v1624_v22 }
 0x481   :  { %v1496_v50 = vadd.f32 %v1495_v6, %v1494_v2 }
 0x482   :  { %v1627_v40 = vrot.slane %v1626_v63, 1 }
 0x483   :  { %v1497_v1 = vrot.slane %v1496_v50, 2 }
 0x484   :  { %v1628_v60 = vadd.f32 %v1627_v40, %v1626_v63 }
 0x485   :  { %v1498_v31 = vadd.f32 %v1497_v1, %v1496_v50  ;;  %s2136_s14 = spop %2135 }
 0x486   :  { %s1246_s16 = sadd.f32 %s2136_s14, %s2134_s13 }
 0x487   :  { %v1499_v37 = vrot.slane %v1498_v31, 1 }
 0x489   :  { %v1500_v13 = vadd.f32 %v1499_v37, %v1498_v31 }
 0x48b   :  { %2139 = vpush %v1500_v13 }
 0x48c   :  { %2141 = vpush %v1628_v60  ;;  %v2006_v32 = vpop.xlane.xlu2 %2005 }
 0x48d   :  { %v2007_v3 = vrot.slane %v2006_v32, 4 }
 0x48f   :  { %v1750_v29 = vpop.xlane.xlu1 %1749  ;;  %v2008_v57 = vadd.f32 %v2007_v3, %v2006_v32 }
 0x490   :  { %v1751_v11 = vrot.slane %v1750_v29, 4 }
 0x491   :  { %v2009_v43 = vrot.slane %v2008_v57, 2 }
 0x492   :  { %v1752_v17 = vadd.f32 %v1751_v11, %v1750_v29 }
 0x493   :  { %v2010_v7 = vadd.f32 %v2009_v43, %v2008_v57 }
 0x494   :  { %v1753_v44 = vrot.slane %v1752_v17, 2 }
 0x495   :  { %v2011_v28 = vrot.slane %v2010_v7, 1 }
 0x496   :  { %v1754_v42 = vadd.f32 %v1753_v44, %v1752_v17 }
 0x497   :  { %v1878_v59 = vpop.xlane.xlu0 %1877  ;;  %v2012_v19 = vadd.f32 %v2011_v28, %v2010_v7 }
 0x498   :  { %v1879_v27 = vrot.slane %v1878_v59, 4  ;;  %v1755_v55 = vrot.slane %v1754_v42, 1 }
 0x49a   :  { %v1880_v51 = vadd.f32 %v1879_v27, %v1878_v59  ;;  %v1756_v10 = vadd.f32 %v1755_v55, %v1754_v42  ;;  %s2138_s15 = spop %2137 }
 0x49b   :  { %s1374_s17 = sadd.f32 %s2138_s15, %s1246_s16 }
 0x49c   :  { %v1881_v8 = vrot.slane %v1880_v51, 2  ;;  %2143 = vpush %v1756_v10 }
 0x49e   :  { %v1882_v5 = vadd.f32 %v1881_v8, %v1880_v51 }
 0x4a0   :  { %v1883_v26 = vrot.slane %v1882_v5, 1 }
 0x4a2   :  { %v1884_v58 = vadd.f32 %v1883_v26, %v1882_v5 }
 0x4a4   :  { %2145 = vpush %v1884_v58 }
 0x4a5   :  { %2147 = vpush %v2012_v19 }
 0x4bc   :  { %s2140_s18 = spop %2139 }
 0x4bd   :  { %s1502_s19 = sadd.f32 %s2140_s18, %s1374_s17  ;;  %s2142_s23 = spop %2141 }
 0x4bf   :  { %s2015_s20 = smul.f32 0.0009765625, %s1502_s19 }
 0x4c1   :  { %v2016_v23 = vstv %s2015_s20 }
 0x4c2   :  { %2018 = vst.msk [vmem:[%s3576_s4] sm:$0x1] %vm2017_vm4, %v2016_v23 }
 0x4cd   :  { %s2144_s24 = spop %2143 }
 0x4ce   :  { %s1758_s25 = sadd.f32 %s2144_s24, %s2142_s23 }
 0x4d5   :  { %s2146_s26 = spop %2145 }
 0x4d6   :  { %s1886_s27 = sadd.f32 %s2146_s26, %s1758_s25  ;;  %s2148_s28 = spop %2147 }
 0x4d8   :  { %s2014_s29 = sadd.f32 %s2148_s28, %s1886_s27 }
 0x4da   :  { %s2019_s1 = smul.f32 0.0009765625, %s2014_s29 }
 0x4dc   :  { %v2020_v0 = vstv %s2019_s1 }
 0x4dd   :  { %2126 = vst.msk [vmem:[%s3576_s4 + $0x1] sm:$0x1] %vm2017_vm4, %v2020_v0 }
 0x4de   :  { %2027 = vsyncpa [#allocation3], 1 }
 0x4df   :  { %2028 = vsyncpa [#allocation5], 1 }
 0x4e0   :  { %2029 = vsyncpa [#allocation8], 1 }

</bundles_post_ra>
